<compile_context>
chip_gen: v7x
topology: tpu7x:2x2x1
jax: 0.10.0
libtpu: 0.0.40
codegen_flags: <defaults>
</compile_context>

<pallas_src>
import functools
import numpy as np
import jax
import jax.numpy as jnp
from jax.experimental import pallas as pl
from jax.experimental.pallas import tpu as pltpu

_F32 = jnp.float32
_BF16 = jnp.bfloat16
_VPAD = 32     # joints padded 25 -> 32 so C*Vp lanes are multiples of 128 (C % 4 == 0)
_GP = 128      # lane stride of one theta/phi inter-channel group (vreg-aligned slices)


# --------------------------------------------------------------------------
# Pallas kernels
# --------------------------------------------------------------------------

def _attn_kernel(xf_ref, pe_ref, wt_ref, bt_ref, wp_ref, bp_ref,
                 att_ref, xmean_ref, acc_ref, xsum_ref,
                 *, denom, t_real, tb, n_groups, gp, v_real, mask_time):
    """Per (n, T-tile): accumulate the VxV attention logits over T and apply
    softmax(dim=-2) at the last tile; also accumulates sum_t x (time-averaged
    frame) for the branch-selection head."""
    j = pl.program_id(1)

    @pl.when(j == 0)
    def _():
        acc_ref[...] = jnp.zeros_like(acc_ref)
        xsum_ref[...] = jnp.zeros_like(xsum_ref)

    x = xf_ref[0]                                              # (TB, C*Vp) bf16
    xsum_ref[...] += jnp.sum(x.astype(_F32), axis=0, keepdims=True)

    x_pe = x + pe_ref[...]                                     # spatial PE (theta/phi only)
    th = jnp.dot(x_pe, wt_ref[...], preferred_element_type=_F32) + bt_ref[...]
    ph = jnp.dot(x_pe, wp_ref[...], preferred_element_type=_F32) + bp_ref[...]

    if mask_time:
        # zero contributions from zero-padded frames (PE/bias would otherwise leak in)
        row = jax.lax.broadcasted_iota(jnp.int32, (tb, 1), 0) + j * tb
        th = th * (row < t_real).astype(_F32)

    # logits[v1, v2] += sum_{t in tile, i} theta[t, i, v1] * phi[t, i, v2]
    logits = jnp.zeros((gp, gp), _F32)
    for i in range(n_groups):                                  # static unroll, aligned slices
        th_i = th[:, i * gp:(i + 1) * gp]                      # (TB, GP)
        ph_i = ph[:, i * gp:(i + 1) * gp]
        logits = logits + jax.lax.dot_general(
            th_i, ph_i, dimension_numbers=(((0,), (0,)), ((), ())),
            preferred_element_type=_F32)
    acc_ref[...] += logits                                     # single scratch RMW per tile

    @pl.when(j == pl.num_programs(1) - 1)
    def _():
        lg = acc_ref[...] * (1.0 / denom)
        vrow = jax.lax.broadcasted_iota(jnp.int32, (gp, gp), 0)
        lg = jnp.where(vrow < v_real, lg, -1e30)               # mask padded joints (rows)
        m = jnp.max(lg, axis=0, keepdims=True)                 # softmax over dim -2
        e = jnp.exp(lg - m)
        att_ref[0] = e / jnp.sum(e, axis=0, keepdims=True)
        xmean_ref[0] = xsum_ref[...] * (1.0 / t_real)


def _fused_kernel(xf_ref, kb_ref, knl_ref, coef_ref, shift_ref, o_ref,
                  *, identity_down):
    """Per (n, T-tile, col-block): all graph branches + nonlocal +
    branch-attention weighted sum + eval-BN + residual + ReLU; writes only the
    final lane-dense tile."""
    x = xf_ref[0]                                              # (TB, C*Vp) bf16
    c = coef_ref[0]                                            # (4, CB) f32
    y = shift_ref[0]                                           # (1, CB) f32 (broadcasts)
    y = y + c[0:1] * jnp.dot(x, kb_ref[0], preferred_element_type=_F32)   # joint
    y = y + c[1:2] * jnp.dot(x, kb_ref[1], preferred_element_type=_F32)   # part (+G_part)
    y = y + c[2:3] * jnp.dot(x, kb_ref[2], preferred_element_type=_F32)   # body (+G_body)
    y = y + c[3:4] * jnp.dot(x, knl_ref[0], preferred_element_type=_F32)  # nonlocal (folded att)
    if identity_down:
        y = y + x.astype(_F32)                                 # residual identity, no matmul
    else:
        y = y + jnp.dot(x, kb_ref[3], preferred_element_type=_F32)        # down conv + BN
    o_ref[0] = jnp.maximum(y, 0.0)


# --------------------------------------------------------------------------
# Generation-aware tile planning
# --------------------------------------------------------------------------

def _vmem_limit_bytes():
    try:
        cap = int(pltpu.get_tpu_info().vmem_capacity_bytes)    # 128 MiB v5e/v6e, 64 MiB v7x
    except Exception:
        cap = 64 * 1024 * 1024
    return max(16 * 1024 * 1024, min(cap * 3 // 4, 112 * 1024 * 1024))


def _plan_tiles(t_real, cv_in, cout_v, ic_gp, nk, vmem_limit, *, identity_down):
    """Pad T to a multiple of 8, pick an output column block CB (multiple of
    128 dividing Cout*Vp) so resident folded weights fit the budget, then the
    largest time tile TB dividing T_pad that fits the remaining VMEM."""
    budget = int(vmem_limit * 0.85)

    if identity_down:
        cb = cout_v                       # kernel adds x directly -> needs full width
    else:
        cands = [d for d in range(128, cout_v + 1, 128) if cout_v % d == 0] or [cout_v]
        w_bytes = lambda d: 2 * (nk + 1) * cv_in * d * 2       # dbuf kbig + K_nl, bf16
        fits = [d for d in cands if w_bytes(d) <= budget // 2]
        cb = max(fits) if fits else min(cands)

    fixed = max(2 * (nk + 1) * cv_in * cb * 2,                 # fused-pass resident weights
                2 * 2 * cv_in * ic_gp * 2) + (4 << 20)         # attn-pass theta/phi weights
    per_row = (2 * 2 * cv_in                                   # x tile bf16, double buffered
               + 2 * 4 * cb                                    # output tile f32, double buffered
               + 2 * 4 * ic_gp                                 # theta/phi f32 temporaries
               + 6 * 4 * max(cb, cv_in))                       # misc in-kernel temporaries
    cap = min(512, max(8, (budget - fixed) // per_row))

    t_pad = -(-t_real // 8) * 8
    tb_cands = [d for d in range(8, t_pad + 1, 8) if t_pad % d == 0 and d <= cap]
    tb = max(tb_cands) if tb_cands else 8
    return t_pad, tb, cb


# --------------------------------------------------------------------------
# pallas_call wrappers
# --------------------------------------------------------------------------

def _attention_pass(x_flat, pe_row, wt_exp, bt_row, wp_exp, bp_row, *,
                    n, t_pad, t_real, tb, cv_in, ic_gp, gp, ic, v_real, vmem_limit):
    kern = functools.partial(
        _attn_kernel, denom=float(ic * t_real), t_real=t_real, tb=tb,
        n_groups=ic, gp=gp, v_real=v_real, mask_time=(t_pad != t_real))
    return pl.pallas_call(
        kern,
        out_shape=(jax.ShapeDtypeStruct((n, gp, gp), _F32),
                   jax.ShapeDtypeStruct((n, 1, cv_in), _F32)),
        grid=(n, t_pad // tb),
        in_specs=[
            pl.BlockSpec((1, tb, cv_in), lambda i, j: (i, j, 0)),
            pl.BlockSpec((1, cv_in), lambda i, j: (0, 0)),
            pl.BlockSpec((cv_in, ic_gp), lambda i, j: (0, 0)),
            pl.BlockSpec((1, ic_gp), lambda i, j: (0, 0)),
            pl.BlockSpec((cv_in, ic_gp), lambda i, j: (0, 0)),
            pl.BlockSpec((1, ic_gp), lambda i, j: (0, 0)),
        ],
        out_specs=(pl.BlockSpec((1, gp, gp), lambda i, j: (i, 0, 0)),
                   pl.BlockSpec((1, 1, cv_in), lambda i, j: (i, 0, 0))),
        scratch_shapes=[pltpu.VMEM((gp, gp), _F32),
                        pltpu.VMEM((1, cv_in), _F32)],
        compiler_params=pltpu.CompilerParams(
            dimension_semantics=("parallel", "arbitrary"),
            vmem_limit_bytes=vmem_limit),
    )(x_flat, pe_row, wt_exp, bt_row, wp_exp, bp_row)


def _fused_pass(x_flat, kbig, knl, coef, shift, *, n, t_pad, tb, cv_in, cout_v,
                cb, identity_down, vmem_limit):
    nk = kbig.shape[0]
    kern = functools.partial(_fused_kernel, identity_down=identity_down)
    return pl.pallas_call(
        kern,
        out_shape=jax.ShapeDtypeStruct((n, t_pad, cout_v), _F32),
        grid=(n, t_pad // tb, cout_v // cb),
        in_specs=[
            pl.BlockSpec((1, tb, cv_in), lambda i, j, k: (i, j, 0)),   # x tile
            pl.BlockSpec((nk, cv_in, cb), lambda i, j, k: (0, 0, k)),  # folded static weights
            pl.BlockSpec((1, cv_in, cb), lambda i, j, k: (i, 0, k)),   # per-sample folded nonlocal
            pl.BlockSpec((1, 4, cb), lambda i, j, k: (i, 0, k)),       # per-sample scales
            pl.BlockSpec((1, 1, cb), lambda i, j, k: (i, 0, k)),       # per-sample shift
        ],
        out_specs=pl.BlockSpec((1, tb, cb), lambda i, j, k: (i, j, k)),
        compiler_params=pltpu.CompilerParams(
            dimension_semantics=("parallel", "parallel", "arbitrary"),
            vmem_limit_bytes=vmem_limit),
    )(x_flat, kbig, knl, coef, shift)


# --------------------------------------------------------------------------
# Parameter construction (deterministic, synthetic)
# --------------------------------------------------------------------------

def init_params(c_in, c_out, v, t, num_subset=3, coff_embedding=4, seed=1):
    assert v == 25, "joint->part->body groupings below assume 25 joints"
    rng = np.random.RandomState(seed)
    ic = c_out // coff_embedding
    d = c_out // 2

    def rand(*shape, scale=0.1):
        return jnp.asarray(rng.randn(*shape).astype(np.float32) * scale)

    p = {}
    # Adjacencies: A + PA with PA initialized to constant 1e-6 (as in __init__).
    p["A_joint"] = rand(num_subset, v, v) + 1e-6
    p["A_part"] = rand(num_subset, 10, 10) + 1e-6
    p["A_body"] = rand(num_subset, 5, 5) + 1e-6
    p["G_part"] = rand(v, v)
    p["G_body"] = rand(v, v)

    conv_scale = float(np.sqrt(2.0 / (c_out * num_subset)))
    for name in ("joint", "part", "body"):
        p[f"W_{name}"] = rand(num_subset, c_out, c_in, scale=conv_scale)
        p[f"b_{name}"] = jnp.zeros((num_subset, c_out, 1), jnp.float32)

    p["W_theta"] = rand(ic, c_in)
    p["b_theta"] = jnp.zeros((ic, 1), jnp.float32)
    p["W_phi"] = rand(ic, c_in)
    p["b_phi"] = jnp.zeros((ic, 1), jnp.float32)
    for name in ("nl", "gpart", "gbody", "down"):
        p[f"W_{name}"] = rand(1, c_out, c_in)
        p[f"b_{name}"] = jnp.zeros((1, c_out, 1), jnp.float32)

    p["fc_w"] = rand(d, c_out)
    p["fc_b"] = jnp.zeros((d,), jnp.float32)
    p["fcb_w"] = rand(3, c_out, d)
    p["fcb_b"] = jnp.zeros((3, c_out), jnp.float32)

    # BatchNorm (eval mode): running stats (0,1); self.bn gamma = 1e-6, beta = 0.
    # TODO(synk): PyTorch training-mode BN (batch statistics) not implemented; eval semantics used.
    eps = 1e-5
    p["bn_scale"] = jnp.full((c_out,), 1e-6 / np.sqrt(1.0 + eps), dtype=jnp.float32)
    p["bn_shift"] = jnp.zeros((c_out,), jnp.float32)
    p["down_bn_scale"] = jnp.asarray(1.0 / np.sqrt(1.0 + eps), dtype=jnp.float32)

    # Spatial sinusoidal positional encoding over vertices.
    # TODO(synk): the PositionalEncoding module is not provided in the snippet; using sinusoidal PE.
    pe = np.zeros((c_in, v), np.float32)
    pos = np.arange(v, dtype=np.float32)[None, :]
    div = np.exp(np.arange(0, c_in, 2, dtype=np.float32) * (-np.log(10000.0) / c_in))[:, None]
    pe[0::2, :] = np.sin(pos * div)
    pe[1::2, :] = np.cos(pos * div)
    p["pe"] = jnp.asarray(pe)

    # Joint <-> part <-> body pooling / unpooling matrices.
    # TODO(synk): Down_Joint2Part / Up_Part2Joint / Down_Part2Body / Up_Body2Part are not
    # defined in the snippet; implemented as deterministic mean-pool down / broadcast up.
    groups10 = [[0, 1, 2], [3, 4, 5], [6, 7], [8, 9, 10], [11, 12],
                [13, 14, 15], [16, 17], [18, 19, 20], [21, 22], [23, 24]]
    groups5 = [[0, 1], [2, 3], [4, 5], [6, 7], [8, 9]]
    d_j2p = np.zeros((v, 10), np.float32)
    u_p2j = np.zeros((10, v), np.float32)
    for pid, g in enumerate(groups10):
        d_j2p[g, pid] = 1.0 / len(g)
        u_p2j[pid, g] = 1.0
    d_p2b = np.zeros((10, 5), np.float32)
    u_b2p = np.zeros((5, 10), np.float32)
    for bid, g in enumerate(groups5):
        d_p2b[g, bid] = 1.0 / len(g)
        u_b2p[bid, g] = 1.0
    p["D_j2p"] = jnp.asarray(d_j2p)
    p["U_p2j"] = jnp.asarray(u_p2j)
    p["D_p2b"] = jnp.asarray(d_p2b)
    p["U_b2p"] = jnp.asarray(u_b2p)
    return p


# --------------------------------------------------------------------------
# One-time weight folding (outside jit)
# --------------------------------------------------------------------------

def prepare_unit_gcn(p, *, v_pad=_VPAD, gp=_GP):
    """Fold all weight-only linear algebra (adjacency x (un)pooling x 1x1 conv
    x subset sum, theta/phi expansion, PE row, BN scales) into the padded
    lane-dense layout consumed by the kernels.  Runs once, outside jit."""
    _, v, _ = p["A_joint"].shape
    cout, c = p["W_nl"][0].shape
    ic = p["W_theta"].shape[0]
    cv_in, cout_v = c * v_pad, cout * v_pad

    def pad_vv(a):
        padw = [(0, 0)] * (a.ndim - 2) + [(0, v_pad - v), (0, v_pad - v)]
        return jnp.pad(a, padw)

    a_joint = pad_vv(p["A_joint"])
    a_part_eff = pad_vv(jnp.einsum('vp,ipq,qw->ivw', p["D_j2p"], p["A_part"], p["U_p2j"]))
    dj2b = p["D_j2p"] @ p["D_p2b"]
    ub2j = p["U_b2p"] @ p["U_p2j"]
    a_body_eff = pad_vv(jnp.einsum('vb,ibc,cw->ivw', dj2b, p["A_body"], ub2j))
    g_part = pad_vv(p["G_part"])[None]
    g_body = pad_vv(p["G_body"])[None]

    def fold(w, a):          # w: (S, Cout, C), a: (S, Vp, Vp)  ->  (C*Vp, Cout*Vp)
        return jnp.einsum('soc,svw->cvow', w, a).reshape(cv_in, cout_v)

    k_joint = fold(p["W_joint"], a_joint)
    k_part = fold(p["W_part"], a_part_eff) + fold(p["W_gpart"], g_part)
    k_body = fold(p["W_body"], a_body_eff) + fold(p["W_gbody"], g_body)

    eye_vp = jnp.eye(v_pad, dtype=_F32)
    if c != cout:
        s = p["down_bn_scale"]
        k_down = jnp.einsum('oc,vw->cvow', p["W_down"][0] * s, eye_vp).reshape(cv_in, cout_v)
        b_down = p["b_down"][0, :, 0] * s
        kbig = jnp.stack([k_joint, k_part, k_body, k_down])
    else:
        # residual is the identity: the kernel adds x directly, no matmul / no extra slice
        b_down = jnp.zeros((cout,), _F32)
        kbig = jnp.stack([k_joint, k_part, k_body])

    # theta / phi 1x1 convs expanded to lane layout, each group padded to a
    # 128-lane stripe so in-kernel slices are vreg aligned.
    e_vg = jnp.eye(v_pad, gp, dtype=_F32)
    wt_exp = jnp.einsum('ic,vg->cvig', p["W_theta"], e_vg).reshape(cv_in, ic * gp)
    wp_exp = jnp.einsum('ic,vg->cvig', p["W_phi"], e_vg).reshape(cv_in, ic * gp)
    bt = jnp.zeros((ic, gp), _F32).at[:, :v].set(jnp.broadcast_to(p["b_theta"], (ic, v)))
    bp = jnp.zeros((ic, gp), _F32).at[:, :v].set(jnp.broadcast_to(p["b_phi"], (ic, v)))

    pe_row = jnp.pad(p["pe"], ((0, 0), (0, v_pad - v))).reshape(1, cv_in)

    b_joint = jnp.sum(p["b_joint"][:, :, 0], axis=0)
    b_part = jnp.sum(p["b_part"][:, :, 0], axis=0) + p["b_gpart"][0, :, 0]
    b_body = jnp.sum(p["b_body"][:, :, 0], axis=0) + p["b_gbody"][0, :, 0]
    b_nl = p["b_nl"][0, :, 0]

    return {
        "kbig": kbig.astype(_BF16),
        "k_sum": (k_joint + k_part + k_body),                 # f32, branch-selection head
        "W_nl": p["W_nl"][0],                                 # (Cout, C) for per-sample K_nl
        "wt_exp": wt_exp.astype(_BF16), "wp_exp": wp_exp.astype(_BF16),
        "bt_row": bt.reshape(1, ic * gp), "bp_row": bp.reshape(1, ic * gp),
        "pe_row": pe_row.astype(_BF16),
        "b_joint": b_joint, "b_part": b_part, "b_body": b_body, "b_nl": b_nl,
        "b_sum": b_joint + b_part + b_body, "b_down": b_down,
        "bn_scale": p["bn_scale"], "bn_shift": p["bn_shift"],
        "fc_w": p["fc_w"], "fc_b": p["fc_b"], "fcb_w": p["fcb_w"], "fcb_b": p["fcb_b"],
    }


# --------------------------------------------------------------------------
# Forward pass
# --------------------------------------------------------------------------

def unit_gcn_forward(x_nctv, f):
    n, c, t, v = x_nctv.shape
    cout = f["bn_scale"].shape[0]
    nk, cv_in, cout_v = f["kbig"].shape
    v_pad = cv_in // c
    ic_gp = f["wt_exp"].shape[1]
    gp = _GP
    ic = ic_gp // gp
    identity_down = (nk == 3)

    vmem_limit = _vmem_limit_bytes()
    t_pad, tb, cb = _plan_tiles(t, cv_in, cout_v, ic_gp, nk, vmem_limit,
                                identity_down=identity_down)

    # (N, C, T, V) -> zero-padded lane-dense (N, T_pad, C*Vp) bf16 slabs
    x_p = jnp.pad(x_nctv, ((0, 0), (0, 0), (0, t_pad - t), (0, v_pad - v)))
    x_flat = jnp.transpose(x_p, (0, 2, 1, 3)).reshape(n, t_pad, cv_in).astype(_BF16)

    # ---- attention map + time-averaged frame (one fused pass over x) --------
    att_full, x_tmean = _attention_pass(
        x_flat, f["pe_row"], f["wt_exp"], f["bt_row"], f["wp_exp"], f["bp_row"],
        n=n, t_pad=t_pad, t_real=t, tb=tb, cv_in=cv_in, ic_gp=ic_gp, gp=gp,
        ic=ic, v_real=v, vmem_limit=vmem_limit)
    att = att_full[:, :v_pad, :v_pad]                         # padded rows ~ 0

    # per-sample folded nonlocal weight: K_nl[(c,v),(o,w)] = W_nl[o,c] * att[v,w]
    knl = jnp.einsum('oc,nvw->ncvow', f["W_nl"], att).reshape(n, cv_in, cout_v).astype(_BF16)

    # ---- branch-selection head (exact: every branch is affine per frame) ----
    xm = x_tmean[:, 0, :]                                     # (N, C*Vp) f32
    glo = (xm @ f["k_sum"]).reshape(n, cout, v_pad)[:, :, :v].mean(-1) + f["b_sum"][None]
    z = glo @ f["fc_w"].T + f["fc_b"]
    vecs = jnp.einsum('nd,kod->nko', z, f["fcb_w"]) + f["fcb_b"][None]
    att_vec = jax.nn.softmax(vecs, axis=1)                    # (N, 3, Cout)

    # fold branch weights + eval-BN + all conv biases into per-sample rows
    bn_s, bn_b = f["bn_scale"], f["bn_shift"]
    coef = jnp.concatenate([att_vec * bn_s[None, None, :],
                            jnp.broadcast_to(bn_s, (n, 1, cout))], axis=1)
    coef = jnp.repeat(coef, v_pad, axis=-1)                   # (N, 4, Cout*Vp)
    shift = (bn_s * (att_vec[:, 0] * f["b_joint"] + att_vec[:, 1] * f["b_part"]
                     + att_vec[:, 2] * f["b_body"] + f["b_nl"])
             + bn_b + f["b_down"])
    shift = jnp.repeat(shift, v_pad, axis=-1)[:, None, :]     # (N, 1, Cout*Vp)

    # ---- fused branches + nonlocal + BN + residual + ReLU --------------------
    y_flat = _fused_pass(x_flat, f["kbig"], knl, coef, shift,
                         n=n, t_pad=t_pad, tb=tb, cv_in=cv_in, cout_v=cout_v,
                         cb=cb, identity_down=identity_down, vmem_limit=vmem_limit)

    y = y_flat.reshape(n, t_pad, cout, v_pad)[:, :t, :, :v]
    return jnp.transpose(y, (0, 2, 1, 3))                     # (N, Cout, T, V)


# --------------------------------------------------------------------------

if __name__ == "__main__":
    N, C_in, C_out, T, V = 2, 4, 16, 8, 25
    params = init_params(C_in, C_out, V, T)
    folded = prepare_unit_gcn(params)          # one-time weight folding, outside jit
    fwd = jax.jit(unit_gcn_forward)
    x = jax.random.normal(jax.random.PRNGKey(0), (N, C_in, T, V), dtype=jnp.float32)
    y = fwd(x, folded)
    jax.block_until_ready(y)
    assert y.shape == (N, C_out, T, V)
    assert bool(jnp.all(jnp.isfinite(y)))
    print("KERNEL_OK")
</pallas_src>

<mosaic_0001>
module attributes {stable_mosaic.version = 11 : i64} {
  func.func @_attn_kernel(%arg0: i32, %arg1: i32, %arg2: memref<1x8x128xbf16, #tpu.memory_space<vmem>>, %arg3: memref<1x128xbf16, #tpu.memory_space<vmem>>, %arg4: memref<128x512xbf16, #tpu.memory_space<vmem>>, %arg5: memref<1x512xf32, #tpu.memory_space<vmem>>, %arg6: memref<128x512xbf16, #tpu.memory_space<vmem>>, %arg7: memref<1x512xf32, #tpu.memory_space<vmem>>, %arg8: memref<1x128x128xf32, #tpu.memory_space<vmem>>, %arg9: memref<1x1x128xf32, #tpu.memory_space<vmem>>, %arg10: memref<128x128xf32, #tpu.memory_space<vmem>>, %arg11: memref<1x128xf32, #tpu.memory_space<vmem>>) attributes {dimension_semantics = [#tpu.dimension_semantics<parallel>, #tpu.dimension_semantics<arbitrary>], iteration_bounds = array<i64: 2, 1>, scalar_prefetch = 0 : i64, scratch_operands = 2 : i64, tpu.core_type = #tpu.core_type<tc>, window_params = [{transform_indices = @transform_0, window_bounds = array<i64: 1, 8, 128>}, {pipeline_mode = #tpu.pipeline_mode<synchronous>, transform_indices = @transform_1, window_bounds = array<i64: 1, 128>}, {pipeline_mode = #tpu.pipeline_mode<synchronous>, transform_indices = @transform_2, window_bounds = array<i64: 128, 512>}, {pipeline_mode = #tpu.pipeline_mode<synchronous>, transform_indices = @transform_3, window_bounds = array<i64: 1, 512>}, {pipeline_mode = #tpu.pipeline_mode<synchronous>, transform_indices = @transform_4, window_bounds = array<i64: 128, 512>}, {pipeline_mode = #tpu.pipeline_mode<synchronous>, transform_indices = @transform_5, window_bounds = array<i64: 1, 512>}, {transform_indices = @transform_6, window_bounds = array<i64: 1, 128, 128>}, {transform_indices = @transform_7, window_bounds = array<i64: 1, 1, 128>}]} {
    %c0_i32 = arith.constant 0 : i32
    %0 = arith.cmpi eq, %arg1, %c0_i32 : i32
    %1 = arith.extui %0 : i1 to i32
    %c0_i32_0 = arith.constant 0 : i32
    %2 = arith.cmpi ne, %1, %c0_i32_0 : i32
    scf.if %2 {
      %cst_30 = arith.constant 0.000000e+00 : f32
      %47 = vector.broadcast %cst_30 : f32 to vector<128x128xf32>
      %c0_31 = arith.constant 0 : index
      %c0_32 = arith.constant 0 : index
      %48 = vector.load %arg10[%c0_31, %c0_32] : memref<128x128xf32, #tpu.memory_space<vmem>>, vector<128x128xf32>
      tpu.vector_store %arg10[%c0_31, %c0_32], %47 {strides = array<i32>} : memref<128x128xf32, #tpu.memory_space<vmem>>, vector<128x128xf32>,
      %cst_33 = arith.constant 0.000000e+00 : f32
      %49 = vector.broadcast %cst_33 : f32 to vector<1x128xf32>
      %c0_34 = arith.constant 0 : index
      %c0_35 = arith.constant 0 : index
      %50 = vector.load %arg11[%c0_34, %c0_35] : memref<1x128xf32, #tpu.memory_space<vmem>>, vector<1x128xf32>
      tpu.vector_store %arg11[%c0_34, %c0_35], %49 {strides = array<i32>} : memref<1x128xf32, #tpu.memory_space<vmem>>, vector<1x128xf32>,
    } else {
    }
    %c0 = arith.constant 0 : index
    %c0_1 = arith.constant 0 : index
    %c0_2 = arith.constant 0 : index
    %3 = vector.load %arg2[%c0, %c0_1, %c0_2] : memref<1x8x128xbf16, #tpu.memory_space<vmem>>, vector<1x8x128xbf16>
    %4 = vector.shape_cast %3 : vector<1x8x128xbf16> to vector<8x128xbf16>
    %c0_3 = arith.constant 0 : index
    %c0_4 = arith.constant 0 : index
    %5 = vector.load %arg11[%c0_3, %c0_4] : memref<1x128xf32, #tpu.memory_space<vmem>>, vector<1x128xf32>
    %6 = arith.extf %4 : vector<8x128xbf16> to vector<8x128xf32>
    %cst = arith.constant dense<0.000000e+00> : vector<128xf32>
    %7 = vector.multi_reduction <add>, %6, %cst [0] : vector<8x128xf32> to vector<128xf32>
    %8 = vector.shape_cast %7 : vector<128xf32> to vector<1x128xf32>
    %9 = arith.addf %5, %8 : vector<1x128xf32>
    %c0_5 = arith.constant 0 : index
    %c0_6 = arith.constant 0 : index
    %10 = vector.load %arg11[%c0_5, %c0_6] : memref<1x128xf32, #tpu.memory_space<vmem>>, vector<1x128xf32>
    tpu.vector_store %arg11[%c0_5, %c0_6], %9 {strides = array<i32>} : memref<1x128xf32, #tpu.memory_space<vmem>>, vector<1x128xf32>,
    %c0_7 = arith.constant 0 : index
    %c0_8 = arith.constant 0 : index
    %11 = vector.load %arg3[%c0_7, %c0_8] : memref<1x128xbf16, #tpu.memory_space<vmem>>, vector<1x128xbf16>
    %12 = vector.broadcast %11 : vector<1x128xbf16> to vector<8x128xbf16>
    %13 = arith.addf %4, %12 : vector<8x128xbf16>
    %c0_9 = arith.constant 0 : index
    %c0_10 = arith.constant 0 : index
    %14 = vector.load %arg4[%c0_9, %c0_10] : memref<128x512xbf16, #tpu.memory_space<vmem>>, vector<128x512xbf16>
    %cst_11 = arith.constant dense<0.000000e+00> : vector<8x512xf32>
    %15 = tpu.matmul %13, %14, %cst_11 {dimension_numbers = #tpu.dot_dimension_numbers<[1], [0], [0], [1], [0, 0, 1, 1], [], []>} : vector<8x128xbf16>, vector<128x512xbf16>, vector<8x512xf32> -> vector<8x512xf32>
    %c0_12 = arith.constant 0 : index
    %c0_13 = arith.constant 0 : index
    %16 = vector.load %arg5[%c0_12, %c0_13] : memref<1x512xf32, #tpu.memory_space<vmem>>, vector<1x512xf32>
    %17 = vector.broadcast %16 : vector<1x512xf32> to vector<8x512xf32>
    %18 = arith.addf %15, %17 : vector<8x512xf32>
    %c0_14 = arith.constant 0 : index
    %c0_15 = arith.constant 0 : index
    %19 = vector.load %arg6[%c0_14, %c0_15] : memref<128x512xbf16, #tpu.memory_space<vmem>>, vector<128x512xbf16>
    %cst_16 = arith.constant dense<0.000000e+00> : vector<8x512xf32>
    %20 = tpu.matmul %13, %19, %cst_16 {dimension_numbers = #tpu.dot_dimension_numbers<[1], [0], [0], [1], [0, 0, 1, 1], [], []>} : vector<8x128xbf16>, vector<128x512xbf16>, vector<8x512xf32> -> vector<8x512xf32>
    %c0_17 = arith.constant 0 : index
    %c0_18 = arith.constant 0 : index
    %21 = vector.load %arg7[%c0_17, %c0_18] : memref<1x512xf32, #tpu.memory_space<vmem>>, vector<1x512xf32>
    %22 = vector.broadcast %21 : vector<1x512xf32> to vector<8x512xf32>
    %23 = arith.addf %20, %22 : vector<8x512xf32>
    %cst_19 = arith.constant 0.000000e+00 : f32
    %24 = vector.broadcast %cst_19 : f32 to vector<128x128xf32>
    %25 = vector.extract_strided_slice %18 {offsets = [0, 0], sizes = [8, 128], strides = [1, 1]} : vector<8x512xf32> to vector<8x128xf32>
    %26 = vector.extract_strided_slice %23 {offsets = [0, 0], sizes = [8, 128], strides = [1, 1]} : vector<8x512xf32> to vector<8x128xf32>
    %cst_20 = arith.constant dense<0.000000e+00> : vector<128x128xf32>
    %27 = tpu.matmul %25, %26, %cst_20 {dimension_numbers = #tpu.dot_dimension_numbers<[0], [0], [1], [1], [0, 1, 1, 1], [], []>} : vector<8x128xf32>, vector<8x128xf32>, vector<128x128xf32> -> vector<128x128xf32>
    %28 = arith.addf %24, %27 : vector<128x128xf32>
    %29 = vector.extract_strided_slice %18 {offsets = [0, 128], sizes = [8, 128], strides = [1, 1]} : vector<8x512xf32> to vector<8x128xf32>
    %30 = vector.extract_strided_slice %23 {offsets = [0, 128], sizes = [8, 128], strides = [1, 1]} : vector<8x512xf32> to vector<8x128xf32>
    %cst_21 = arith.constant dense<0.000000e+00> : vector<128x128xf32>
    %31 = tpu.matmul %29, %30, %cst_21 {dimension_numbers = #tpu.dot_dimension_numbers<[0], [0], [1], [1], [0, 1, 1, 1], [], []>} : vector<8x128xf32>, vector<8x128xf32>, vector<128x128xf32> -> vector<128x128xf32>
    %32 = arith.addf %28, %31 : vector<128x128xf32>
    %33 = vector.extract_strided_slice %18 {offsets = [0, 256], sizes = [8, 128], strides = [1, 1]} : vector<8x512xf32> to vector<8x128xf32>
    %34 = vector.extract_strided_slice %23 {offsets = [0, 256], sizes = [8, 128], strides = [1, 1]} : vector<8x512xf32> to vector<8x128xf32>
    %cst_22 = arith.constant dense<0.000000e+00> : vector<128x128xf32>
    %35 = tpu.matmul %33, %34, %cst_22 {dimension_numbers = #tpu.dot_dimension_numbers<[0], [0], [1], [1], [0, 1, 1, 1], [], []>} : vector<8x128xf32>, vector<8x128xf32>, vector<128x128xf32> -> vector<128x128xf32>
    %36 = arith.addf %32, %35 : vector<128x128xf32>
    %37 = vector.extract_strided_slice %18 {offsets = [0, 384], sizes = [8, 128], strides = [1, 1]} : vector<8x512xf32> to vector<8x128xf32>
    %38 = vector.extract_strided_slice %23 {offsets = [0, 384], sizes = [8, 128], strides = [1, 1]} : vector<8x512xf32> to vector<8x128xf32>
    %cst_23 = arith.constant dense<0.000000e+00> : vector<128x128xf32>
    %39 = tpu.matmul %37, %38, %cst_23 {dimension_numbers = #tpu.dot_dimension_numbers<[0], [0], [1], [1], [0, 1, 1, 1], [], []>} : vector<8x128xf32>, vector<8x128xf32>, vector<128x128xf32> -> vector<128x128xf32>
    %40 = arith.addf %36, %39 : vector<128x128xf32>
    %c0_24 = arith.constant 0 : index
    %c0_25 = arith.constant 0 : index
    %41 = vector.load %arg10[%c0_24, %c0_25] : memref<128x128xf32, #tpu.memory_space<vmem>>, vector<128x128xf32>
    %42 = arith.addf %41, %40 : vector<128x128xf32>
    %c0_26 = arith.constant 0 : index
    %c0_27 = arith.constant 0 : index
    %43 = vector.load %arg10[%c0_26, %c0_27] : memref<128x128xf32, #tpu.memory_space<vmem>>, vector<128x128xf32>
    tpu.vector_store %arg10[%c0_26, %c0_27], %42 {strides = array<i32>} : memref<128x128xf32, #tpu.memory_space<vmem>>, vector<128x128xf32>,
    %c0_i32_28 = arith.constant 0 : i32
    %44 = arith.cmpi eq, %arg1, %c0_i32_28 : i32
    %45 = arith.extui %44 : i1 to i32
    %c0_i32_29 = arith.constant 0 : i32
    %46 = arith.cmpi ne, %45, %c0_i32_29 : i32
    scf.if %46 {
      %c0_30 = arith.constant 0 : index
      %c0_31 = arith.constant 0 : index
      %47 = vector.load %arg10[%c0_30, %c0_31] : memref<128x128xf32, #tpu.memory_space<vmem>>, vector<128x128xf32>
      %cst_32 = arith.constant 3.125000e-02 : f32
      %48 = vector.broadcast %cst_32 : f32 to vector<128x128xf32>
      %49 = arith.mulf %47, %48 : vector<128x128xf32>
      %50 = tpu.iota {dimensions = array<i32: 0>} : vector<128x128xi32>
      %c25_i32 = arith.constant 25 : i32
      %51 = vector.broadcast %c25_i32 : i32 to vector<128x128xi32>
      %52 = arith.cmpi slt, %50, %51 : vector<128x128xi32>
      %cst_33 = arith.constant -1.000000e+30 : f32
      %53 = vector.broadcast %cst_33 : f32 to vector<128x128xf32>
      %54 = arith.select %52, %49, %53 : vector<128x128xi1>, vector<128x128xf32>
      %cst_34 = arith.constant dense<0xFF800000> : vector<128xf32>
      %55 = vector.multi_reduction <maximumf>, %54, %cst_34 [0] : vector<128x128xf32> to vector<128xf32>
      %56 = vector.shape_cast %55 : vector<128xf32> to vector<1x128xf32>
      %57 = vector.broadcast %56 : vector<1x128xf32> to vector<128x128xf32>
      %58 = arith.subf %54, %57 : vector<128x128xf32>
      %59 = math.exp %58 : vector<128x128xf32>
      %cst_35 = arith.constant dense<0.000000e+00> : vector<128xf32>
      %60 = vector.multi_reduction <add>, %59, %cst_35 [0] : vector<128x128xf32> to vector<128xf32>
      %61 = vector.shape_cast %60 : vector<128xf32> to vector<1x128xf32>
      %62 = vector.broadcast %61 : vector<1x128xf32> to vector<128x128xf32>
      %63 = arith.divf %59, %62 : vector<128x128xf32>
      %c0_36 = arith.constant 0 : index
      %c0_37 = arith.constant 0 : index
      %c0_38 = arith.constant 0 : index
      %64 = vector.load %arg8[%c0_36, %c0_37, %c0_38] : memref<1x128x128xf32, #tpu.memory_space<vmem>>, vector<1x128x128xf32>
      %65 = vector.shape_cast %64 : vector<1x128x128xf32> to vector<128x128xf32>
      %66 = vector.shape_cast %63 : vector<128x128xf32> to vector<1x128x128xf32>
      tpu.vector_store %arg8[%c0_36, %c0_37, %c0_38], %66 {strides = array<i32>} : memref<1x128x128xf32, #tpu.memory_space<vmem>>, vector<1x128x128xf32>,
      %c0_39 = arith.constant 0 : index
      %c0_40 = arith.constant 0 : index
      %67 = vector.load %arg11[%c0_39, %c0_40] : memref<1x128xf32, #tpu.memory_space<vmem>>, vector<1x128xf32>
      %cst_41 = arith.constant 1.250000e-01 : f32
      %68 = vector.broadcast %cst_41 : f32 to vector<1x128xf32>
      %69 = arith.mulf %67, %68 : vector<1x128xf32>
      %c0_42 = arith.constant 0 : index
      %c0_43 = arith.constant 0 : index
      %c0_44 = arith.constant 0 : index
      %70 = vector.load %arg9[%c0_42, %c0_43, %c0_44] : memref<1x1x128xf32, #tpu.memory_space<vmem>>, vector<1x1x128xf32>
      %71 = vector.shape_cast %70 : vector<1x1x128xf32> to vector<1x128xf32>
      %72 = vector.shape_cast %69 : vector<1x128xf32> to vector<1x1x128xf32>
      tpu.vector_store %arg9[%c0_42, %c0_43, %c0_44], %72 {strides = array<i32>} : memref<1x1x128xf32, #tpu.memory_space<vmem>>, vector<1x1x128xf32>,
    } else {
    }
    return
  }
  func.func @transform_0(%arg0: i32, %arg1: i32) -> (i32, i32, i32) {
    %c0_i32 = arith.constant 0 : i32
    %c0_i32_0 = arith.constant 0 : i32
    return %arg0, %arg1, %c0_i32 : i32, i32, i32
  }
  func.func @transform_1(%arg0: i32, %arg1: i32) -> (i32, i32) {
    %c0_i32 = arith.constant 0 : i32
    %c0_i32_0 = arith.constant 0 : i32
    %c0_i32_1 = arith.constant 0 : i32
    return %c0_i32, %c0_i32_0 : i32, i32
  }
  func.func @transform_2(%arg0: i32, %arg1: i32) -> (i32, i32) {
    %c0_i32 = arith.constant 0 : i32
    %c0_i32_0 = arith.constant 0 : i32
    %c0_i32_1 = arith.constant 0 : i32
    return %c0_i32, %c0_i32_0 : i32, i32
  }
  func.func @transform_3(%arg0: i32, %arg1: i32) -> (i32, i32) {
    %c0_i32 = arith.constant 0 : i32
    %c0_i32_0 = arith.constant 0 : i32
    %c0_i32_1 = arith.constant 0 : i32
    return %c0_i32, %c0_i32_0 : i32, i32
  }
  func.func @transform_4(%arg0: i32, %arg1: i32) -> (i32, i32) {
    %c0_i32 = arith.constant 0 : i32
    %c0_i32_0 = arith.constant 0 : i32
    %c0_i32_1 = arith.constant 0 : i32
    return %c0_i32, %c0_i32_0 : i32, i32
  }
  func.func @transform_5(%arg0: i32, %arg1: i32) -> (i32, i32) {
    %c0_i32 = arith.constant 0 : i32
    %c0_i32_0 = arith.constant 0 : i32
    %c0_i32_1 = arith.constant 0 : i32
    return %c0_i32, %c0_i32_0 : i32, i32
  }
  func.func @transform_6(%arg0: i32, %arg1: i32) -> (i32, i32, i32) {
    %c0_i32 = arith.constant 0 : i32
    %c0_i32_0 = arith.constant 0 : i32
    %c0_i32_1 = arith.constant 0 : i32
    return %arg0, %c0_i32, %c0_i32_0 : i32, i32, i32
  }
  func.func @transform_7(%arg0: i32, %arg1: i32) -> (i32, i32, i32) {
    %c0_i32 = arith.constant 0 : i32
    %c0_i32_0 = arith.constant 0 : i32
    %c0_i32_1 = arith.constant 0 : i32
    return %arg0, %c0_i32, %c0_i32_0 : i32, i32, i32
  }
}

module attributes {stable_mosaic.version = 11 : i64} {
  func.func @_fused_kernel(%arg0: i32, %arg1: i32, %arg2: i32, %arg3: memref<1x8x128xbf16, #tpu.memory_space<vmem>>, %arg4: memref<4x128x512xbf16, #tpu.memory_space<vmem>>, %arg5: memref<1x128x512xbf16, #tpu.memory_space<vmem>>, %arg6: memref<1x4x512xf32, #tpu.memory_space<vmem>>, %arg7: memref<1x1x512xf32, #tpu.memory_space<vmem>>, %arg8: memref<1x8x512xf32, #tpu.memory_space<vmem>>) attributes {dimension_semantics = [#tpu.dimension_semantics<parallel>, #tpu.dimension_semantics<parallel>, #tpu.dimension_semantics<arbitrary>], iteration_bounds = array<i64: 2, 1, 1>, scalar_prefetch = 0 : i64, scratch_operands = 0 : i64, tpu.core_type = #tpu.core_type<tc>, window_params = [{transform_indices = @transform_0, window_bounds = array<i64: 1, 8, 128>}, {transform_indices = @transform_1, window_bounds = array<i64: 4, 128, 512>}, {transform_indices = @transform_2, window_bounds = array<i64: 1, 128, 512>}, {transform_indices = @transform_3, window_bounds = array<i64: 1, 4, 512>}, {transform_indices = @transform_4, window_bounds = array<i64: 1, 1, 512>}, {transform_indices = @transform_5, window_bounds = array<i64: 1, 8, 512>}]} {
    %c0 = arith.constant 0 : index
    %c0_0 = arith.constant 0 : index
    %c0_1 = arith.constant 0 : index
    %0 = vector.load %arg3[%c0, %c0_0, %c0_1] : memref<1x8x128xbf16, #tpu.memory_space<vmem>>, vector<1x8x128xbf16>
    %1 = vector.shape_cast %0 : vector<1x8x128xbf16> to vector<8x128xbf16>
    %c0_2 = arith.constant 0 : index
    %c0_3 = arith.constant 0 : index
    %c0_4 = arith.constant 0 : index
    %2 = vector.load %arg6[%c0_2, %c0_3, %c0_4] : memref<1x4x512xf32, #tpu.memory_space<vmem>>, vector<1x4x512xf32>
    %3 = vector.shape_cast %2 : vector<1x4x512xf32> to vector<4x512xf32>
    %c0_5 = arith.constant 0 : index
    %c0_6 = arith.constant 0 : index
    %c0_7 = arith.constant 0 : index
    %4 = vector.load %arg7[%c0_5, %c0_6, %c0_7] : memref<1x1x512xf32, #tpu.memory_space<vmem>>, vector<1x1x512xf32>
    %5 = vector.shape_cast %4 : vector<1x1x512xf32> to vector<1x512xf32>
    %6 = vector.extract_strided_slice %3 {offsets = [0, 0], sizes = [1, 512], strides = [1, 1]} : vector<4x512xf32> to vector<1x512xf32>
    %c0_8 = arith.constant 0 : index
    %c0_9 = arith.constant 0 : index
    %c0_10 = arith.constant 0 : index
    %7 = vector.load %arg4[%c0_8, %c0_9, %c0_10] : memref<4x128x512xbf16, #tpu.memory_space<vmem>>, vector<1x128x512xbf16>
    %8 = vector.shape_cast %7 : vector<1x128x512xbf16> to vector<128x512xbf16>
    %cst = arith.constant dense<0.000000e+00> : vector<8x512xf32>
    %9 = tpu.matmul %1, %8, %cst {dimension_numbers = #tpu.dot_dimension_numbers<[1], [0], [0], [1], [0, 0, 1, 1], [], []>} : vector<8x128xbf16>, vector<128x512xbf16>, vector<8x512xf32> -> vector<8x512xf32>
    %10 = vector.broadcast %6 : vector<1x512xf32> to vector<8x512xf32>
    %11 = arith.mulf %10, %9 : vector<8x512xf32>
    %12 = vector.broadcast %5 : vector<1x512xf32> to vector<8x512xf32>
    %13 = arith.addf %12, %11 : vector<8x512xf32>
    %14 = vector.extract_strided_slice %3 {offsets = [1, 0], sizes = [1, 512], strides = [1, 1]} : vector<4x512xf32> to vector<1x512xf32>
    %c1 = arith.constant 1 : index
    %c0_11 = arith.constant 0 : index
    %c0_12 = arith.constant 0 : index
    %15 = vector.load %arg4[%c1, %c0_11, %c0_12] : memref<4x128x512xbf16, #tpu.memory_space<vmem>>, vector<1x128x512xbf16>
    %16 = vector.shape_cast %15 : vector<1x128x512xbf16> to vector<128x512xbf16>
    %cst_13 = arith.constant dense<0.000000e+00> : vector<8x512xf32>
    %17 = tpu.matmul %1, %16, %cst_13 {dimension_numbers = #tpu.dot_dimension_numbers<[1], [0], [0], [1], [0, 0, 1, 1], [], []>} : vector<8x128xbf16>, vector<128x512xbf16>, vector<8x512xf32> -> vector<8x512xf32>
    %18 = vector.broadcast %14 : vector<1x512xf32> to vector<8x512xf32>
    %19 = arith.mulf %18, %17 : vector<8x512xf32>
    %20 = arith.addf %13, %19 : vector<8x512xf32>
    %21 = vector.extract_strided_slice %3 {offsets = [2, 0], sizes = [1, 512], strides = [1, 1]} : vector<4x512xf32> to vector<1x512xf32>
    %c2 = arith.constant 2 : index
    %c0_14 = arith.constant 0 : index
    %c0_15 = arith.constant 0 : index
    %22 = vector.load %arg4[%c2, %c0_14, %c0_15] : memref<4x128x512xbf16, #tpu.memory_space<vmem>>, vector<1x128x512xbf16>
    %23 = vector.shape_cast %22 : vector<1x128x512xbf16> to vector<128x512xbf16>
    %cst_16 = arith.constant dense<0.000000e+00> : vector<8x512xf32>
    %24 = tpu.matmul %1, %23, %cst_16 {dimension_numbers = #tpu.dot_dimension_numbers<[1], [0], [0], [1], [0, 0, 1, 1], [], []>} : vector<8x128xbf16>, vector<128x512xbf16>, vector<8x512xf32> -> vector<8x512xf32>
    %25 = vector.broadcast %21 : vector<1x512xf32> to vector<8x512xf32>
    %26 = arith.mulf %25, %24 : vector<8x512xf32>
    %27 = arith.addf %20, %26 : vector<8x512xf32>
    %28 = vector.extract_strided_slice %3 {offsets = [3, 0], sizes = [1, 512], strides = [1, 1]} : vector<4x512xf32> to vector<1x512xf32>
    %c0_17 = arith.constant 0 : index
    %c0_18 = arith.constant 0 : index
    %c0_19 = arith.constant 0 : index
    %29 = vector.load %arg5[%c0_17, %c0_18, %c0_19] : memref<1x128x512xbf16, #tpu.memory_space<vmem>>, vector<1x128x512xbf16>
    %30 = vector.shape_cast %29 : vector<1x128x512xbf16> to vector<128x512xbf16>
    %cst_20 = arith.constant dense<0.000000e+00> : vector<8x512xf32>
    %31 = tpu.matmul %1, %30, %cst_20 {dimension_numbers = #tpu.dot_dimension_numbers<[1], [0], [0], [1], [0, 0, 1, 1], [], []>} : vector<8x128xbf16>, vector<128x512xbf16>, vector<8x512xf32> -> vector<8x512xf32>
    %32 = vector.broadcast %28 : vector<1x512xf32> to vector<8x512xf32>
    %33 = arith.mulf %32, %31 : vector<8x512xf32>
    %34 = arith.addf %27, %33 : vector<8x512xf32>
    %c3 = arith.constant 3 : index
    %c0_21 = arith.constant 0 : index
    %c0_22 = arith.constant 0 : index
    %35 = vector.load %arg4[%c3, %c0_21, %c0_22] : memref<4x128x512xbf16, #tpu.memory_space<vmem>>, vector<1x128x512xbf16>
    %36 = vector.shape_cast %35 : vector<1x128x512xbf16> to vector<128x512xbf16>
    %cst_23 = arith.constant dense<0.000000e+00> : vector<8x512xf32>
    %37 = tpu.matmul %1, %36, %cst_23 {dimension_numbers = #tpu.dot_dimension_numbers<[1], [0], [0], [1], [0, 0, 1, 1], [], []>} : vector<8x128xbf16>, vector<128x512xbf16>, vector<8x512xf32> -> vector<8x512xf32>
    %38 = arith.addf %34, %37 : vector<8x512xf32>
    %cst_24 = arith.constant 0.000000e+00 : f32
    %39 = vector.broadcast %cst_24 : f32 to vector<8x512xf32>
    %40 = arith.maximumf %38, %39 : vector<8x512xf32>
    %c0_25 = arith.constant 0 : index
    %c0_26 = arith.constant 0 : index
    %c0_27 = arith.constant 0 : index
    %41 = vector.load %arg8[%c0_25, %c0_26, %c0_27] : memref<1x8x512xf32, #tpu.memory_space<vmem>>, vector<1x8x512xf32>
    %42 = vector.shape_cast %41 : vector<1x8x512xf32> to vector<8x512xf32>
    %43 = vector.shape_cast %40 : vector<8x512xf32> to vector<1x8x512xf32>
    tpu.vector_store %arg8[%c0_25, %c0_26, %c0_27], %43 {strides = array<i32>} : memref<1x8x512xf32, #tpu.memory_space<vmem>>, vector<1x8x512xf32>,
    return
  }
  func.func @transform_0(%arg0: i32, %arg1: i32, %arg2: i32) -> (i32, i32, i32) {
    %c0_i32 = arith.constant 0 : i32
    %c0_i32_0 = arith.constant 0 : i32
    return %arg0, %arg1, %c0_i32 : i32, i32, i32
  }
  func.func @transform_1(%arg0: i32, %arg1: i32, %arg2: i32) -> (i32, i32, i32) {
    %c0_i32 = arith.constant 0 : i32
    %c0_i32_0 = arith.constant 0 : i32
    %c0_i32_1 = arith.constant 0 : i32
    return %c0_i32, %c0_i32_0, %arg2 : i32, i32, i32
  }
  func.func @transform_2(%arg0: i32, %arg1: i32, %arg2: i32) -> (i32, i32, i32) {
    %c0_i32 = arith.constant 0 : i32
    %c0_i32_0 = arith.constant 0 : i32
    return %arg0, %c0_i32, %arg2 : i32, i32, i32
  }
  func.func @transform_3(%arg0: i32, %arg1: i32, %arg2: i32) -> (i32, i32, i32) {
    %c0_i32 = arith.constant 0 : i32
    %c0_i32_0 = arith.constant 0 : i32
    return %arg0, %c0_i32, %arg2 : i32, i32, i32
  }
  func.func @transform_4(%arg0: i32, %arg1: i32, %arg2: i32) -> (i32, i32, i32) {
    %c0_i32 = arith.constant 0 : i32
    %c0_i32_0 = arith.constant 0 : i32
    return %arg0, %c0_i32, %arg2 : i32, i32, i32
  }
  func.func @transform_5(%arg0: i32, %arg1: i32, %arg2: i32) -> (i32, i32, i32) {
    %c0_i32 = arith.constant 0 : i32
    return %arg0, %arg1, %arg2 : i32, i32, i32
  }
}

</mosaic_0001>

<bundles_post_ra>
// kernel: unit_gcn_forward.2
= control target key start
LH: loop header
LB: loop body
LE: loop exit
PB: predicated region body
PF: predicated region fallthrough
CT: control target
= control target key end

     0   :  { %13 = vsyncpa [#allocation5], 0  ;;  %s3393_s0 = inlined_call_operand.vmem [shape: bf16[2,8,128], index: 0, kind: input, shape index: {}]   ;;  %s3394_s1 = inlined_call_operand.hbm [shape: bf16[1,128], index: 1, kind: input, shape index: {}]   ;;  %s3395_s2 = inlined_call_operand.hbm [shape: bf16[128,512], index: 2, kind: input, shape index: {}]   ;;  %s3396_s3 = inlined_call_operand.hbm [shape: f32[1,512], index: 3, kind: input, shape index: {}]   ;;  %s3397_s4 = inlined_call_operand.hbm [shape: bf16[128,512], index: 4, kind: input, shape index: {}]   ;;  %s3398_s5 = inlined_call_operand.hbm [shape: f32[1,512], index: 5, kind: input, shape index: {}]   ;;  %s3399_s6 = inlined_call_operand.vmem [shape: f32[2,128,128], index: 6, kind: output, shape index: {0}]   ;;  %s3400_s7 = inlined_call_operand.vmem [shape: f32[2,1,128], index: 7, kind: output, shape index: {1}]  }
   0x1   :  { %14 = vsyncpa [#allocation7], 0 }
   0x2   :  { %15 = vsyncpa [#allocation10], 0  ;;  %s3087_s24 = smov 0   ;;  %s3089_s25 = smov 0  }
   0x3   :  { %s3091_s26 = smov 0  }
   0x4 LB: > { %s3038_s27 = smov [#allocation6]   ;;  %s2342_s29 = sadd.s32 4294967295, %s3036_s26   ;;  %s3036_s26 = sphi %s3091_s26, %s21_s26   ;;  %s3032_s25 = sphi %s3089_s25, %s3411_s25   ;;  %s3028_s24 = sphi %s3087_s24, %s3410_s24  }
   0x5   : > { %s246_s28 = sshll.u32 %s3038_s27, 4  ;;  %p2344_p0 = scmp.ge.s32.totalorder %s3036_s26, 1  ;;  %s3109_s28 = int_to_ptr.vmem [resolvable:$true] %s246_s28 }
   0x6   : > { %p223_p1 = scmp.lt.s32.totalorder %s3036_s26, 3  ;;  %p3105_p2 = scmp.eq.s32.totalorder %s2342_s29, 0 }
   0x7   : > { %s3039_s9 = smov [#allocation9]   ;;  %s33_s12 = sadd.s32 1, %s3032_s25 }
   0x8   : > { %s3404_s30 = scalar_select %p3105_p2, 1, 0 }
   0x9   : > { %p3111_p3 = pnand %p2344_p0, %p223_p1  ;;  %s270_s10 = sshll.u32 %s3039_s9, 4  ;;  %s3117_s10 = int_to_ptr.vmem [resolvable:$true] %s270_s10 }
   0xa   : > { %s2862_s15 = scalar_lea.hbm %s3395_s2, 4096 }
   0xb   : > { %s3405_s8 = scalar_select %p3111_p3, 1, 0 }
   0xc   : > { %p2695_p4 = pneg %p3111_p3  ;;  %p2863_p6 = scmp.ne.s32.totalorder %s3395_s2, %s2862_s15 }
   0xd   : > { %p2869_p10 = scmp.lt.u32.totalorder %s2862_s15, %s3395_s2 }
   0xe   : > { %p3121_p5 = pnand %p3105_p2, %p2695_p4 }
  0x10   : > { %p3134_p7 = pneg %p3121_p5 }
  0x12   : > { %p2865_p8 = pnand %p3134_p7, %p2863_p6 }
  0x14   : > { %p2866_p9 = pneg %p2865_p8 }
  0x16   : > { %p2871_p11 = pnand %p2869_p10, %p2866_p9 }
  0x18   : > { %2874 = shalt.err (!%p2871_p11)
}
  0x19   : > { %s2875_s21 = scalar_lea.vmem %s3109_s28, 4096  ;;  %p2883_p1 = scmp.lt.s32.totalorder %s3109_s28, %s3109_s28 }
  0x1a   : > { %p2876_p12 = scmp.ne.s32.totalorder %s3109_s28, %s2875_s21  ;;  %p2884_p4 = scmp.lt.s32.totalorder %s2875_s21, %s2875_s21 }
  0x1c   : > { %p2878_p13 = pnand %p2876_p12, %p3134_p7  ;;  %p2885_p6 = por %p2884_p4, %p2883_p1 }
  0x1e   : > { %p2879_p0 = pneg %p2878_p13 }
  0x20   : > { %p2886_p8 = pnand %p2885_p6, %p2879_p0 }
  0x22   : > { %2889 = shalt.err (!%p2886_p8)
}
  0x23   : > { %s3040_s22 = smov 256   ;;  %s3041_s23 = smov 16  }
  0x24   : > { %2701 = dma.hbm_to_vmem [thread:$0]  (!%p3121_p5), %s3395_s2, 4096, %s3109_s28, [#allocation7], %s3040_s22, %s3040_s22, %s3041_s23  }
  0x25   : > { %s2890_s14 = scalar_lea.hbm %s3397_s4, 4096 }
  0x26   : > { %p2891_p9 = scmp.ne.s32.totalorder %s3397_s4, %s2890_s14  ;;  %p2897_p12 = scmp.lt.u32.totalorder %s2890_s14, %s3397_s4 }
  0x28   : > { %p2893_p10 = pnand %p2891_p9, %p3134_p7 }
  0x2a   : > { %p2894_p11 = pneg %p2893_p10 }
  0x2c   : > { %p2899_p13 = pnand %p2897_p12, %p2894_p11 }
  0x2e   : > { %2902 = shalt.err (!%p2899_p13)
}
  0x2f   : > { %s2903_s28 = scalar_lea.vmem %s3117_s10, 4096  ;;  %p2911_p6 = scmp.lt.s32.totalorder %s3117_s10, %s3117_s10 }
  0x30   : > { %p2904_p0 = scmp.ne.s32.totalorder %s3117_s10, %s2903_s28  ;;  %p2912_p8 = scmp.lt.s32.totalorder %s2903_s28, %s2903_s28 }
  0x32   : > { %p2906_p1 = pnand %p2904_p0, %p3134_p7  ;;  %p2913_p9 = por %p2912_p8, %p2911_p6 }
  0x34   : > { %p2907_p4 = pneg %p2906_p1 }
  0x36   : > { %p2914_p10 = pnand %p2913_p9, %p2907_p4 }
  0x38   : > { %2917 = shalt.err (!%p2914_p10)
}
  0x39   : > { %2707 = dma.hbm_to_vmem [thread:$0]  (!%p3121_p5), %s3397_s4, 4096, %s3117_s10, [#allocation10], %s3040_s22, %s3040_s22, %s3041_s23  }
  0x3a   : > { %p35_p11 = scmp.ge.s32.totalorder %s33_s12, 2  ;;  %s3042_s27 = smov [#allocation4]  }
  0x3b   : > { %s236_s29 = sshll.u32 %s3042_s27, 4  ;;  %s3043_s9 = smov [#allocation8]   ;;  %s237_s29 = int_to_ptr.vmem [resolvable:$true] %s236_s29 }
  0x3c   : > { %s3413_s12 = smov (%p35_p11, %s33_s12), 0  ;;  %s260_s13 = sshll.u32 %s3043_s9, 4  ;;  %s261_s13 = int_to_ptr.vmem [resolvable:$true] %s260_s13 }
  0x3d   : > { %s2918_s16 = scalar_lea.hbm %s3394_s1, 16 }
  0x3e   : > { %p2919_p12 = scmp.ne.s32.totalorder %s3394_s1, %s2918_s16  ;;  %p2925_p1 = scmp.lt.u32.totalorder %s2918_s16, %s3394_s1 }
  0x40   : > { %p2921_p13 = pnand %p2919_p12, %p3134_p7 }
  0x42   : > { %p2922_p0 = pneg %p2921_p13 }
  0x44   : > { %p2927_p4 = pnand %p2925_p1, %p2922_p0 }
  0x46   : > { %2930 = shalt.err (!%p2927_p4)
}
  0x47   : > { %s2931_s23 = scalar_lea.vmem %s237_s29, 16  ;;  %s2938_s28 = scalar_lea.vmem %s237_s29, 32 }
  0x48   : > { %p2932_p6 = scmp.ne.s32.totalorder %s237_s29, %s2931_s23  ;;  %p2939_p10 = scmp.lt.s32.totalorder %s237_s29, %s237_s29 }
  0x49   : > { %p2940_p11 = scmp.lt.s32.totalorder %s2938_s28, %s2931_s23 }
  0x4a   : > { %p2934_p8 = pnand %p2932_p6, %p3134_p7 }
  0x4b   : > { %p2941_p2 = por %p2940_p11, %p2939_p10 }
  0x4c   : > { %p2935_p9 = pneg %p2934_p8 }
  0x4e   : > { %p2942_p3 = pnand %p2941_p2, %p2935_p9 }
  0x50   : > { %2945 = shalt.err (!%p2942_p3)
}
  0x51   : > { %2698 = dma.hbm_to_vmem [thread:$0]  (!%p3121_p5), %s3394_s1, 16, %s237_s29, [#allocation5]  }
  0x52   : > { %s2946_s14 = scalar_lea.hbm %s3396_s3, 64 }
  0x53   : > { %p2947_p12 = scmp.ne.s32.totalorder %s3396_s3, %s2946_s14  ;;  %p2953_p3 = scmp.lt.u32.totalorder %s2946_s14, %s3396_s3 }
  0x55   : > { %p2949_p13 = pnand %p2947_p12, %p3134_p7 }
  0x57   : > { %p2950_p2 = pneg %p2949_p13 }
  0x59   : > { %p2955_p0 = pnand %p2953_p3, %p2950_p2 }
  0x5b   : > { %2958 = shalt.err (!%p2955_p0)
}
  0x5c   : > { %s2959_s10 = scalar_lea.vmem %s261_s13, 64  ;;  %p2967_p8 = scmp.lt.s32.totalorder %s261_s13, %s261_s13 }
  0x5d   : > { %p2960_p1 = scmp.ne.s32.totalorder %s261_s13, %s2959_s10  ;;  %p2968_p9 = scmp.lt.s32.totalorder %s2959_s10, %s2959_s10 }
  0x5f   : > { %p2962_p4 = pnand %p2960_p1, %p3134_p7  ;;  %p2969_p10 = por %p2968_p9, %p2967_p8 }
  0x61   : > { %p2963_p6 = pneg %p2962_p4 }
  0x63   : > { %p2970_p11 = pnand %p2969_p10, %p2963_p6 }
  0x65   : > { %2973 = shalt.err (!%p2970_p11)
}
  0x66   : > { %2704 = dma.hbm_to_vmem [thread:$0]  (!%p3121_p5), %s3396_s3, 64, %s261_s13, [#allocation7]  }
  0x67   : > { %s3044_s23 = smov [#allocation11]   ;;  %s2974_s27 = scalar_lea.hbm %s3398_s5, 64 }
  0x68   : > { %s284_s28 = sshll.u32 %s3044_s23, 4  ;;  %p2975_p12 = scmp.ne.s32.totalorder %s3398_s5, %s2974_s27  ;;  %s285_s28 = int_to_ptr.vmem [resolvable:$true] %s284_s28 }
  0x69   : > { %p2981_p3 = scmp.lt.u32.totalorder %s2974_s27, %s3398_s5 }
  0x6a   : > { %p2977_p13 = pnand %p2975_p12, %p3134_p7 }
  0x6c   : > { %p2978_p2 = pneg %p2977_p13 }
  0x6e   : > { %p2983_p0 = pnand %p2981_p3, %p2978_p2 }
  0x70   : > { %2986 = shalt.err (!%p2983_p0)
}
  0x71   : > { %s2987_s13 = scalar_lea.vmem %s285_s28, 64  ;;  %p2995_p8 = scmp.lt.s32.totalorder %s285_s28, %s285_s28 }
  0x72   : > { %p2988_p1 = scmp.ne.s32.totalorder %s285_s28, %s2987_s13  ;;  %p2996_p9 = scmp.lt.s32.totalorder %s2987_s13, %s2987_s13 }
  0x74   : > { %p2990_p4 = pnand %p2988_p1, %p3134_p7  ;;  %p2997_p10 = por %p2996_p9, %p2995_p8 }
  0x76   : > { %p2991_p6 = pneg %p2990_p4 }
  0x78   : > { %p2998_p11 = pnand %p2997_p10, %p2991_p6 }
  0x7a   : > { %3001 = shalt.err (!%p2998_p11)
}
  0x7b   : > { %2710 = dma.hbm_to_vmem [thread:$0]  (!%p3121_p5), %s3398_s5, 64, %s285_s28, [#allocation10]  }
  0x7c   : > { %p3408_p12 = scmp.ne.s32.totalorder %s3405_s8, 0 }
  0x7d   : > { %p3409_p13 = scmp.ne.s32.totalorder (!%p3408_p12), %s3404_s30, 0 }
  0x7e   : > { %307 = sbr.rel (%p3408_p12) target bundleno = 996 (0x3e4), region = 44 }
  0x85   : > { %3015 = dma.done.wait (%p3409_p13), [#allocation5], 16  }
  0x86   : > { %3017 = vsyncadd (%p3409_p13), [#allocation5], 4294967280 }
  0x87   : > { %3019 = dma.done.wait (%p3409_p13), [#allocation7], 4160  }
  0x88   : > { %3021 = vsyncadd (%p3409_p13), [#allocation7], 4294963136 }
  0x89   : > { %3023 = dma.done.wait (%p3409_p13), [#allocation10], 4160  }
  0x8a   : > { %3025 = vsyncadd (%p3409_p13), [#allocation10], 4294963136  ;;  %v3045_v0 = vmov 0   ;;  %v3046_v1 = vmov 0.0   ;;  %p360_p5 = scmp.lt.s32.totalorder %s3028_s24, 1  ;;  %v412_v14 = vlaneseq  ;;  %vm1041_vm0 = vcmask 64512  }
  0x8b   : > { %663 = vmatprep.mubr.bf16.mxu1 %v3045_v0  ;;  %396 = vst [vmem:[#allocation3] sm:$0x1] %v3046_v1  ;;  %v2754_v2 = vld [vmem:[#allocation6 + $0x4] ss:$16 sps:$4 sm:$0xff]   ;;  %v2756_v3 = vld [vmem:[#allocation6] ss:$16 sps:$4 sm:$0xff]  }
  0x8c   : > { %s3415_s24 = smov (!%p360_p5, %s3028_s24), 1  ;;  %631 = vmatprep.subr.bf16.mxu1 %v2754_v2  ;;  %v2757_v4 = vld [vmem:[#allocation6 + $0x24] ss:$16 sps:$4 sm:$0xff]   ;;  %v2759_v5 = vld [vmem:[#allocation6 + $0x20] ss:$16 sps:$4 sm:$0xff]   ;;  %v3261_v19 = vshrl.u32 %v412_v14, 7 }
  0x8d   : > { %632 = vmatpush1.bf16.msra.mxu1 %v2756_v3  ;;  %v2760_v6 = vld [vmem:[#allocation6 + $0x44] ss:$16 sps:$4 sm:$0xff]   ;;  %s2357_s30 = sshll.u32 %s3415_s24, 2  ;;  %v2762_v7 = vld [vmem:[#allocation6 + $0x40] ss:$16 sps:$4 sm:$0xff]   ;;  %s374_s22 = scalar_lea.vmem %s3400_s7, %s3415_s24 }
  0x8e   : > { %633 = vmatprep.subr.bf16.mxu1 %v2757_v4  ;;  %s366_s18 = scalar_lea.vmem %s3393_s0, %s2357_s30  ;;  %v2763_v8 = vld [vmem:[#allocation6 + $0x64] ss:$16 sps:$4 sm:$0xff]   ;;  %v2765_v10 = vld [vmem:[#allocation6 + $0x60] ss:$16 sps:$4 sm:$0xff]   ;;  %v408_v22 = vld [vmem:[#allocation4] sm:$0x1] }
  0x8f   : > { %v397_v9 = vld [vmem:[%s366_s18] sm:$0xf]  ;;  %v2766_v12 = vld [vmem:[#allocation6 + $0x84] ss:$16 sps:$4 sm:$0xff]   ;;  %v410_v26 = vpack.i.b16 %v408_v22, %v408_v22  ;;  %v3264_v27 = vsub.s32 0, %v3261_v19  ;;  %v457_v22 = vsub.s32 1, %v3261_v19 }
  0x90   : > { %v399_v11 = vunpack.c.l.bf16 %v397_v9  ;;  %v2768_v15 = vld [vmem:[#allocation6 + $0x80] ss:$16 sps:$4 sm:$0xff]   ;;  %v2769_v17 = vld [vmem:[#allocation6 + $0xa4] ss:$16 sps:$4 sm:$0xff]   ;;  %v2780_v34 = vld [vmem:[#allocation6 + $0xc] ss:$16 sps:$4 sm:$0xff]  }
  0x91   : > { %634 = vmatpush1.bf16.msra.mxu1 %v2759_v5  ;;  %v2771_v20 = vld [vmem:[#allocation6 + $0xa0] ss:$16 sps:$4 sm:$0xff]   ;;  %v2772_v23 = vld [vmem:[#allocation6 + $0xc4] ss:$16 sps:$4 sm:$0xff]   ;;  %v415_v32 = vrot.slane %v410_v26, %v3264_v27  ;;  %v2778_v36 = vld [vmem:[#allocation6 + $0x8] ss:$16 sps:$4 sm:$0xff]  }
  0x92   : > { %635 = vmatprep.subr.bf16.mxu1 %v2760_v6  ;;  %v400_v13 = vrot.slane %v399_v11, 4  ;;  %v398_v25 = vld [vmem:[#allocation3] sm:$0x1]  ;;  %v2774_v28 = vld [vmem:[#allocation6 + $0xc0] ss:$16 sps:$4 sm:$0xff]   ;;  %s2490_s23 = sshll.u32 %s3415_s24, 7 }
  0x93   : > { %v2775_v30 = vld [vmem:[#allocation6 + $0xe4] ss:$16 sps:$4 sm:$0xff]   ;;  %v2777_v33 = vld [vmem:[#allocation6 + $0xe0] ss:$16 sps:$4 sm:$0xff]   ;;  %v3267_v35 = vadd.bf16 %v415_v32, %v397_v9  ;;  %v2783_v37 = vld [vmem:[#allocation6 + $0x2c] ss:$16 sps:$4 sm:$0xff]   ;;  %s371_s21 = scalar_lea.vmem %s3399_s6, %s2490_s23 }
  0x94   : > { %v401_v16 = vadd.f32 %v400_v13, %v399_v11  ;;  %v2781_v40 = vld [vmem:[#allocation6 + $0x28] ss:$16 sps:$4 sm:$0xff]   ;;  %v2786_v41 = vld [vmem:[#allocation6 + $0x4c] ss:$16 sps:$4 sm:$0xff]   ;;  %v2802_v54 = vld [vmem:[#allocation9] ss:$16 sps:$4 sm:$0xff]  }
  0x95   : > { %636 = vmatpush1.bf16.msra.mxu1 %v2762_v7  ;;  %v2784_v42 = vld [vmem:[#allocation6 + $0x48] ss:$16 sps:$4 sm:$0xff]   ;;  %v2789_v43 = vld [vmem:[#allocation6 + $0x6c] ss:$16 sps:$4 sm:$0xff]   ;;  %v2805_v56 = vld [vmem:[#allocation9 + $0x20] ss:$16 sps:$4 sm:$0xff]  }
  0x96   : > { %637 = vmatprep.subr.bf16.mxu1 %v2763_v8  ;;  %v402_v18 = vrot.slane %v401_v16, 2  ;;  %v2787_v44 = vld [vmem:[#allocation6 + $0x68] ss:$16 sps:$4 sm:$0xff]   ;;  %v2792_v45 = vld [vmem:[#allocation6 + $0x8c] ss:$16 sps:$4 sm:$0xff]  }
  0x97   : > { %v2790_v46 = vld [vmem:[#allocation6 + $0x88] ss:$16 sps:$4 sm:$0xff]   ;;  %v2795_v47 = vld [vmem:[#allocation6 + $0xac] ss:$16 sps:$4 sm:$0xff]   ;;  %v2808_v58 = vld [vmem:[#allocation9 + $0x40] ss:$16 sps:$4 sm:$0xff]  }
  0x98   : > { %v403_v21 = vadd.f32 %v402_v18, %v401_v16  ;;  %v2793_v48 = vld [vmem:[#allocation6 + $0xa8] ss:$16 sps:$4 sm:$0xff]   ;;  %v2798_v49 = vld [vmem:[#allocation6 + $0xcc] ss:$16 sps:$4 sm:$0xff]   ;;  %v2811_v60 = vld [vmem:[#allocation9 + $0x60] ss:$16 sps:$4 sm:$0xff]  }
  0x99   : > { %638 = vmatpush1.bf16.msra.mxu1 %v2765_v10  ;;  %v2796_v50 = vld [vmem:[#allocation6 + $0xc8] ss:$16 sps:$4 sm:$0xff]   ;;  %v2801_v51 = vld [vmem:[#allocation6 + $0xec] ss:$16 sps:$4 sm:$0xff]   ;;  %v2814_v62 = vld [vmem:[#allocation9 + $0x80] ss:$16 sps:$4 sm:$0xff]  }
  0x9a   : > { %639 = vmatprep.subr.bf16.mxu1 %v2766_v12  ;;  %v404_v24 = vrot.slane %v403_v21, 1  ;;  %v2799_v52 = vld [vmem:[#allocation6 + $0xe8] ss:$16 sps:$4 sm:$0xff]   ;;  %v2817_v1 = vld [vmem:[#allocation9 + $0xa0] ss:$16 sps:$4 sm:$0xff]  }
  0x9b   : > { %v2804_v53 = vld [vmem:[#allocation9 + $0x4] ss:$16 sps:$4 sm:$0xff]   ;;  %v2820_v3 = vld [vmem:[#allocation9 + $0xc0] ss:$16 sps:$4 sm:$0xff]   ;;  %v2828_v6 = vld [vmem:[#allocation9 + $0xc] ss:$16 sps:$4 sm:$0xff]  }
  0x9c   : > { %v405_v29 = vadd.f32 %v404_v24, %v403_v21  ;;  %v2807_v55 = vld [vmem:[#allocation9 + $0x24] ss:$16 sps:$4 sm:$0xff]   ;;  %v2823_v5 = vld [vmem:[#allocation9 + $0xe0] ss:$16 sps:$4 sm:$0xff]   ;;  %v2826_v7 = vld [vmem:[#allocation9 + $0x8] ss:$16 sps:$4 sm:$0xff]  }
  0x9d   : > { %640 = vmatpush1.bf16.msra.mxu1 %v2768_v15  ;;  %v2810_v57 = vld [vmem:[#allocation9 + $0x44] ss:$16 sps:$4 sm:$0xff]   ;;  %v2831_v8 = vld [vmem:[#allocation9 + $0x2c] ss:$16 sps:$4 sm:$0xff]   ;;  %v2829_v9 = vld [vmem:[#allocation9 + $0x28] ss:$16 sps:$4 sm:$0xff]  }
  0x9e   : > { %641 = vmatprep.subr.bf16.mxu1 %v2769_v17  ;;  %v406_v31 = vadd.f32 %v405_v29, %v398_v25  ;;  %v2813_v59 = vld [vmem:[#allocation9 + $0x64] ss:$16 sps:$4 sm:$0xff]   ;;  %v2834_v10 = vld [vmem:[#allocation9 + $0x4c] ss:$16 sps:$4 sm:$0xff]   ;;  %v2832_v11 = vld [vmem:[#allocation9 + $0x48] ss:$16 sps:$4 sm:$0xff]  }
  0x9f   : > { %v2816_v61 = vld [vmem:[#allocation9 + $0x84] ss:$16 sps:$4 sm:$0xff]   ;;  %v2837_v12 = vld [vmem:[#allocation9 + $0x6c] ss:$16 sps:$4 sm:$0xff]   ;;  %v2835_v13 = vld [vmem:[#allocation9 + $0x68] ss:$16 sps:$4 sm:$0xff]  }
  0xa0   : > { %407 = vst [vmem:[#allocation3] sm:$0x1] %v406_v31  ;;  %v2819_v63 = vld [vmem:[#allocation9 + $0xa4] ss:$16 sps:$4 sm:$0xff]   ;;  %v2840_v14 = vld [vmem:[#allocation9 + $0x8c] ss:$16 sps:$4 sm:$0xff]  }
  0xa1   : > { %642 = vmatpush1.bf16.msra.mxu1 %v2771_v20  ;;  %v2822_v2 = vld [vmem:[#allocation9 + $0xc4] ss:$16 sps:$4 sm:$0xff]   ;;  %v2838_v15 = vld [vmem:[#allocation9 + $0x88] ss:$16 sps:$4 sm:$0xff]   ;;  %v2843_v16 = vld [vmem:[#allocation9 + $0xac] ss:$16 sps:$4 sm:$0xff]  }
  0xa2   : > { %643 = vmatprep.subr.bf16.mxu1 %v2772_v23  ;;  %v2825_v4 = vld [vmem:[#allocation9 + $0xe4] ss:$16 sps:$4 sm:$0xff]   ;;  %v2841_v17 = vld [vmem:[#allocation9 + $0xa8] ss:$16 sps:$4 sm:$0xff]   ;;  %v2849_v20 = vld [vmem:[#allocation9 + $0xec] ss:$16 sps:$4 sm:$0xff]  }
  0xa3   : > { %v2844_v18 = vld [vmem:[#allocation9 + $0xc8] ss:$16 sps:$4 sm:$0xff]   ;;  %v449_v23 = vld [vmem:[#allocation8] sm:$0xf]  ;;  %v461_v31 = vsub.s32 2, %v3261_v19 }
  0xa4   : > { %v2847_v21 = vld [vmem:[#allocation9 + $0xe8] ss:$16 sps:$4 sm:$0xff]   ;;  %v458_v24 = vrot.slane %v449_v23, %v457_v22 }
  0xa5   : > { %644 = vmatpush1.bf16.msra.mxu1 %v2774_v28  ;;  %v462_v32 = vrot.slane %v449_v23, %v461_v31 }
  0xa6   : > { %645 = vmatprep.subr.bf16.mxu1 %v2775_v30 }
  0xa7   : > { %v2197_v38 = vld [vmem:[#allocation3] sm:$0x1] }
  0xa8   : > { %v2198_v39 = vmul.f32 0.125, %v2197_v38 }
  0xa9   : > { %646 = vmatpush1.bf16.msra.mxu1 %v2777_v33 }
  0xaa   : > { %672 = vmatprep.subr.bf16.mxu1 %v2780_v34  ;;  %2199 = vst [vmem:[%s374_s22] sm:$0x1] %v2198_v39  ;;  %v3283_v39 = vld [vmem:[#allocation11] sm:$0xf] }
  0xac   : > { %664 = vmatmul.mubr.bf16.vlgmr.msra.gmra.mrb[0].mxu1 %v3267_v35 }
  0xad   : > { %673 = vmatpush1.bf16.msra.mxu1 %v2778_v36  ;;  %704 = vmatprep.mubr.bf16.mxu1 %v3045_v0 }
  0xae   : > { %674 = vmatprep.subr.bf16.mxu1 %v2783_v37 }
  0xb1   : > { %675 = vmatpush1.bf16.msra.mxu1 %v2781_v40  ;;  %v750_v40 = vrot.slane %v3283_v39, %v3264_v27 }
  0xb2   : > { %676 = vmatprep.subr.bf16.mxu1 %v2786_v41  ;;  %v754_v41 = vrot.slane %v3283_v39, %v457_v22 }
  0xb5   : > { %677 = vmatpush1.bf16.msra.mxu1 %v2784_v42 }
  0xb6   : > { %678 = vmatprep.subr.bf16.mxu1 %v2789_v43 }
  0xb9   : > { %679 = vmatpush1.bf16.msra.mxu1 %v2787_v44 }
  0xba   : > { %680 = vmatprep.subr.bf16.mxu1 %v2792_v45 }
  0xbd   : > { %681 = vmatpush1.bf16.msra.mxu1 %v2790_v46 }
  0xbe   : > { %682 = vmatprep.subr.bf16.mxu1 %v2795_v47 }
  0xc1   : > { %683 = vmatpush1.bf16.msra.mxu1 %v2793_v48 }
  0xc2   : > { %684 = vmatprep.subr.bf16.mxu1 %v2798_v49  ;;  %v465_v49 = vsub.s32 3, %v3261_v19 }
  0xc5   : > { %685 = vmatpush1.bf16.msra.mxu1 %v2796_v50  ;;  %v466_v50 = vrot.slane %v449_v23, %v465_v49 }
  0xc6   : > { %686 = vmatprep.subr.bf16.mxu1 %v2801_v51 }
  0xc9   : > { %687 = vmatpush1.bf16.msra.mxu1 %v2799_v52 }
  0xca   : > { %927 = vmatprep.subr.bf16.mxu1 %v2804_v53 }
  0xcc   : > { %705 = vmatmul.mubr.bf16.vlgmr.msra.gmra.mrb[4].mxu1 %v3267_v35 }
  0xcd   : > { %928 = vmatpush1.bf16.msra.mxu1 %v2802_v54  ;;  %959 = vmatprep.mubr.bf16.mxu1 %v3045_v0 }
  0xce   : > { %929 = vmatprep.subr.bf16.mxu1 %v2807_v55  ;;  %v758_v55 = vrot.slane %v3283_v39, %v461_v31 }
  0xd1   : > { %930 = vmatpush1.bf16.msra.mxu1 %v2805_v56 }
  0xd2   : > { %931 = vmatprep.subr.bf16.mxu1 %v2810_v57 }
  0xd5   : > { %932 = vmatpush1.bf16.msra.mxu1 %v2808_v58 }
  0xd6   : > { %933 = vmatprep.subr.bf16.mxu1 %v2813_v59 }
  0xd9   : > { %934 = vmatpush1.bf16.msra.mxu1 %v2811_v60 }
  0xda   : > { %935 = vmatprep.subr.bf16.mxu1 %v2816_v61 }
  0xdd   : > { %936 = vmatpush1.bf16.msra.mxu1 %v2814_v62 }
  0xde   : > { %937 = vmatprep.subr.bf16.mxu1 %v2819_v63 }
  0xe1   : > { %938 = vmatpush1.bf16.msra.mxu1 %v2817_v1 }
  0xe2   : > { %939 = vmatprep.subr.bf16.mxu1 %v2822_v2 }
  0xe5   : > { %940 = vmatpush1.bf16.msra.mxu1 %v2820_v3 }
  0xe6   : > { %941 = vmatprep.subr.bf16.mxu1 %v2825_v4 }
  0xe9   : > { %942 = vmatpush1.bf16.msra.mxu1 %v2823_v5 }
  0xea   : > { %968 = vmatprep.subr.bf16.mxu1 %v2828_v6 }
  0xec   : > { %960 = vmatmul.mubr.bf16.vlgmr.msra.gmra.mrb[8].mxu1 %v3267_v35 }
  0xed   : > { %969 = vmatpush1.bf16.msra.mxu1 %v2826_v7  ;;  %1000 = vmatprep.mubr.bf16.mxu1 %v3045_v0  ;;  %v2846_v0 = vld [vmem:[#allocation9 + $0xcc] ss:$16 sps:$4 sm:$0xff]  }
  0xee   : > { %970 = vmatprep.subr.bf16.mxu1 %v2831_v8 }
  0xf1   : > { %971 = vmatpush1.bf16.msra.mxu1 %v2829_v9 }
  0xf2   : > { %972 = vmatprep.subr.bf16.mxu1 %v2834_v10 }
  0xf5   : > { %973 = vmatpush1.bf16.msra.mxu1 %v2832_v11 }
  0xf6   : > { %974 = vmatprep.subr.bf16.mxu1 %v2837_v12 }
  0xf9   : > { %975 = vmatpush1.bf16.msra.mxu1 %v2835_v13 }
  0xfa   : > { %976 = vmatprep.subr.bf16.mxu1 %v2840_v14 }
  0xfd   : > { %977 = vmatpush1.bf16.msra.mxu1 %v2838_v15 }
  0xfe   : > { %978 = vmatprep.subr.bf16.mxu1 %v2843_v16 }
 0x101   : > { %979 = vmatpush1.bf16.msra.mxu1 %v2841_v17 }
 0x102   : > { %980 = vmatprep.subr.bf16.mxu1 %v2846_v0 }
 0x105   : > { %981 = vmatpush1.bf16.msra.mxu1 %v2844_v18  ;;  %v762_v18 = vrot.slane %v3283_v39, %v465_v49 }
 0x106   : > { %982 = vmatprep.subr.bf16.mxu1 %v2849_v20 }
 0x109   : > { %983 = vmatpush1.bf16.msra.mxu1 %v2847_v21 }
 0x10c   : > { %1001 = vmatmul.mubr.bf16.vlgmr.msra.gmra.mrb[12].mxu1 %v3267_v35  ;;  %v454_v35 = vrot.slane %v449_v23, %v3264_v27 }
 0x17f   : > { %v665_v25 = vpop.f32.mrb[0].mxu1 }
 0x180   : > { %v667_v26 = vpop.f32.mrb[1].mxu1  ;;  %v666_v42 = vadd.f32 %v665_v25, %v454_v35 }
 0x181   : > { %v669_v28 = vpop.f32.mrb[2].mxu1  ;;  %v668_v29 = vadd.f32 %v667_v26, %v458_v24 }
 0x182   : > { %v670_v30 = vpop.f32.mrb[3].mxu1 }
 0x183   : > { %1009 = vxpose.xlu0.b32.start.end [1/1] (short) %v668_v29, 128 }
 0x19f   : > { %v706_v33 = vpop.f32.mrb[4].mxu1 }
 0x1a0   : > { %v707_v34 = vadd.f32 %v706_v33, %v462_v32  ;;  %v708_v36 = vpop.f32.mrb[5].mxu1 }
 0x1a1   : > { %v710_v37 = vpop.f32.mrb[6].mxu1  ;;  %v709_v51 = vadd.f32 %v708_v36, %v466_v50 }
 0x1a2   : > { %1460 = vxpose.xlu1.b32.start.end [1/1] (short) %v707_v34, 128  ;;  %v711_v38 = vpop.f32.mrb[7].mxu1 }
 0x1bf   : > { %v961_v43 = vpop.f32.mrb[8].mxu1 }
 0x1c0   : > { %1235 = vxpose.xlu0.b32.start.end [1/1] (short) %v666_v42, 128  ;;  %v963_v44 = vpop.f32.mrb[9].mxu1  ;;  %v962_v45 = vadd.f32 %v961_v43, %v750_v40 }
 0x1c1   : > { %v964_v46 = vadd.f32 %v963_v44, %v754_v41  ;;  %v965_v47 = vpop.f32.mrb[10].mxu1 }
 0x1c2   : > { %v966_v48 = vpop.f32.mrb[11].mxu1 }
 0x1c3   : > { %2559 = vmatprep.subr.mxu0 %v964_v46 }
 0x1c4   : > { %2560 = vmatpush3.msra.mxu0 %v964_v46 }
 0x1c5   : > { %2585 = vmatprep.subr.mxu0 %v962_v45 }
 0x1df   : > { %1701 = vxpose.xlu1.b32.start.end [1/1] (short) %v709_v51, 128  ;;  %v1002_v52 = vpop.f32.mrb[12].mxu1 }
 0x1e0   : > { %v1004_v27 = vpop.f32.mrb[13].mxu1  ;;  %v1003_v57 = vadd.f32 %v1002_v52, %v758_v55 }
 0x1e1   : > { %v1006_v53 = vpop.f32.mrb[14].mxu1  ;;  %v1005_v21 = vadd.f32 %v1004_v27, %v762_v18 }
 0x1e2   : > { %v1007_v54 = vpop.f32.mrb[15].mxu1 }
 0x203   : > { %v1025_v56 = vpop.trf.xlu0 }
 0x204   : > { %2561 = vmatprep.mubr.msk.f32.mxu0 %vm1041_vm0, %v1025_v56 }
 0x207   : > { %v1026_v58 = vpop.trf.xlu0 }
 0x208   : > { %2562 = vmatmul.mubr.msk.f32.vlgmr.msra.gmra.mrb[0].mxu0 %vm1041_vm0, %v1026_v58 }
 0x209   : > { %2586 = vmatpush3.msra.mxu0 %v962_v45 }
 0x20a   : > { %2611 = vmatprep.subr.mxu0 %v1003_v57 }
 0x20b   : > { %v1027_v59 = vpop.trf.xlu0 }
 0x20c   : > { %2564 = vmatprep.mubr.msk.f32.mxu0 %vm1041_vm0, %v1027_v59 }
 0x20f   : > { %v1028_v60 = vpop.trf.xlu0 }
 0x210   : > { %2565 = vmatmul.mubr.msk.f32.gmra.mrb[2].mxu0 %vm1041_vm0, %v1028_v60 }
 0x213   : > { %v1029_v61 = vpop.trf.xlu0 }
 0x214   : > { %2567 = vmatprep.mubr.msk.f32.mxu0 %vm1041_vm0, %v1029_v61 }
 0x217   : > { %v1030_v62 = vpop.trf.xlu0 }
 0x218   : > { %2568 = vmatmul.mubr.msk.f32.gmra.mrb[4].mxu0 %vm1041_vm0, %v1030_v62 }
 0x21b   : > { %v1031_v63 = vpop.trf.xlu0 }
 0x21c   : > { %2570 = vmatprep.mubr.msk.f32.mxu0 %vm1041_vm0, %v1031_v63 }
 0x21f   : > { %v1032_v1 = vpop.trf.xlu0 }
 0x220   : > { %2571 = vmatmul.mubr.msk.f32.gmra.mrb[6].mxu0 %vm1041_vm0, %v1032_v1 }
 0x222   : > { %v3298_v2 = vpop.trf.xlu1 }
 0x223   : > { %v1033_v3 = vpop.trf.xlu0 }
 0x224   : > { %2573 = vmatprep.mubr.msk.f32.mxu0 %vm1041_vm0, %v1033_v3 }
 0x226   : > { %v3301_v4 = vpop.trf.xlu1 }
 0x227   : > { %v1034_v5 = vpop.trf.xlu0 }
 0x228   : > { %2574 = vmatmul.mubr.msk.f32.gmra.mrb[8].mxu0 %vm1041_vm0, %v1034_v5 }
 0x22a   : > { %v3304_v6 = vpop.trf.xlu1 }
 0x22b   : > { %v1035_v7 = vpop.trf.xlu0 }
 0x22c   : > { %2576 = vmatprep.mubr.msk.f32.mxu0 %vm1041_vm0, %v1035_v7 }
 0x22e   : > { %v3307_v8 = vpop.trf.xlu1 }
 0x22f   : > { %v1036_v9 = vpop.trf.xlu0 }
 0x230   : > { %2577 = vmatmul.mubr.msk.f32.gmra.mrb[10].mxu0 %vm1041_vm0, %v1036_v9 }
 0x232   : > { %v3310_v10 = vpop.trf.xlu1 }
 0x233   : > { %v1037_v11 = vpop.trf.xlu0 }
 0x234   : > { %2579 = vmatprep.mubr.msk.f32.mxu0 %vm1041_vm0, %v1037_v11 }
 0x236   : > { %v3313_v12 = vpop.trf.xlu1 }
 0x237   : > { %v1038_v13 = vpop.trf.xlu0 }
 0x238   : > { %2580 = vmatmul.mubr.msk.f32.gmra.mrb[12].mxu0 %vm1041_vm0, %v1038_v13 }
 0x23a   : > { %v3316_v14 = vpop.trf.xlu1 }
 0x23b   : > { %v1039_v15 = vpop.trf.xlu0 }
 0x23c   : > { %2582 = vmatprep.mubr.msk.f32.mxu0 %vm1041_vm0, %v1039_v15 }
 0x23e   : > { %v3319_v16 = vpop.trf.xlu1 }
 0x23f   : > { %v1040_v17 = vpop.trf.xlu0 }
 0x240   : > { %2583 = vmatmul.mubr.msk.f32.gmra.mrb[14].mxu0 %vm1041_vm0, %v1040_v17 }
 0x242   : > { %v1484_v0 = vpop.trf.xlu1 }
 0x243   : > { %v1251_v20 = vpop.trf.xlu0 }
 0x244   : > { %2587 = vmatprep.mubr.msk.f32.mxu0 %vm1041_vm0, %v1251_v20 }
 0x246   : > { %v1485_v22 = vpop.trf.xlu1 }
 0x247   : > { %v1252_v23 = vpop.trf.xlu0 }
 0x248   : > { %2588 = vmatmul.mubr.msk.f32.vlgmr.msra.gmra.mrb[0].mxu0 %vm1041_vm0, %v1252_v23 }
 0x249   : > { %2612 = vmatpush3.msra.mxu0 %v1003_v57 }
 0x24a   : > { %2637 = vmatprep.subr.mxu0 %v1005_v21  ;;  %v1486_v24 = vpop.trf.xlu1 }
 0x24b   : > { %v1253_v25 = vpop.trf.xlu0 }
 0x24c   : > { %2590 = vmatprep.mubr.msk.f32.mxu0 %vm1041_vm0, %v1253_v25 }
 0x24e   : > { %v1487_v26 = vpop.trf.xlu1 }
 0x24f   : > { %v1254_v28 = vpop.trf.xlu0 }
 0x250   : > { %2591 = vmatmul.mubr.msk.f32.gmra.mrb[2].mxu0 %vm1041_vm0, %v1254_v28 }
 0x252   : > { %v1488_v29 = vpop.trf.xlu1 }
 0x253   : > { %v1255_v30 = vpop.trf.xlu0 }
 0x254   : > { %2593 = vmatprep.mubr.msk.f32.mxu0 %vm1041_vm0, %v1255_v30 }
 0x256   : > { %v1489_v31 = vpop.trf.xlu1 }
 0x257   : > { %v1256_v32 = vpop.trf.xlu0 }
 0x258   : > { %2594 = vmatmul.mubr.msk.f32.gmra.mrb[16].mxu0 %vm1041_vm0, %v1256_v32 }
 0x25a   : > { %v1490_v33 = vpop.trf.xlu1 }
 0x25b   : > { %v1257_v34 = vpop.trf.xlu0 }
 0x25c   : > { %2596 = vmatprep.mubr.msk.f32.mxu0 %vm1041_vm0, %v1257_v34 }
 0x25e   : > { %v1491_v37 = vpop.trf.xlu1 }
 0x25f   : > { %v1258_v36 = vpop.trf.xlu0 }
 0x260   : > { %2597 = vmatmul.mubr.msk.f32.gmra.mrb[18].mxu0 %vm1041_vm0, %v1258_v36  ;;  %v2029_v36 = vadd.s32 24, %v3261_v19 }
 0x262   : > { %v1717_v35 = vpop.trf.xlu1  ;;  %vm2045_vm1 = vcmp.lt.s32.totalorder %v2029_v36, 25 }
 0x263   : > { %v1259_v38 = vpop.trf.xlu0 }
 0x264   : > { %2599 = vmatprep.mubr.msk.f32.mxu0 %vm1041_vm0, %v1259_v38 }
 0x266   : > { %v1718_v41 = vpop.trf.xlu1 }
 0x267   : > { %v1260_v39 = vpop.trf.xlu0 }
 0x268   : > { %2600 = vmatmul.mubr.msk.f32.gmra.mrb[20].mxu0 %vm1041_vm0, %v1260_v39 }
 0x26a   : > { %v1719_v43 = vpop.trf.xlu1 }
 0x26b   : > { %v1261_v40 = vpop.trf.xlu0 }
 0x26c   : > { %2602 = vmatprep.mubr.msk.f32.mxu0 %vm1041_vm0, %v1261_v40 }
 0x26e   : > { %v1720_v46 = vpop.trf.xlu1 }
 0x26f   : > { %v1262_v42 = vpop.trf.xlu0 }
 0x270   : > { %2603 = vmatmul.mubr.msk.f32.gmra.mrb[22].mxu0 %vm1041_vm0, %v1262_v42 }
 0x272   : > { %v1721_v48 = vpop.trf.xlu1 }
 0x273   : > { %v1263_v44 = vpop.trf.xlu0 }
 0x274   : > { %2605 = vmatprep.mubr.msk.f32.mxu0 %vm1041_vm0, %v1263_v44 }
 0x276   : > { %v1722_v50 = vpop.trf.xlu1 }
 0x277   : > { %v1264_v45 = vpop.trf.xlu0 }
 0x278   : > { %2606 = vmatmul.mubr.msk.f32.gmra.mrb[24].mxu0 %vm1041_vm0, %v1264_v45 }
 0x27a   : > { %v1723_v51 = vpop.trf.xlu1 }
 0x27b   : > { %v1265_v47 = vpop.trf.xlu0 }
 0x27c   : > { %2608 = vmatprep.mubr.msk.f32.mxu0 %vm1041_vm0, %v1265_v47 }
 0x27e   : > { %v1724_v52 = vpop.trf.xlu1 }
 0x27f   : > { %v1266_v49 = vpop.trf.xlu0 }
 0x280   : > { %2609 = vmatmul.mubr.msk.f32.gmra.mrb[26].mxu0 %vm1041_vm0, %v1266_v49 }
 0x281   : > { %2613 = vmatprep.mubr.msk.f32.mxu0 %vm1041_vm0, %v3298_v2 }
 0x282   : > { %v1725_v27 = vpop.trf.xlu1 }
 0x284   : > { %2614 = vmatmul.mubr.msk.f32.vlgmr.msra.gmra.mrb[0].mxu0 %vm1041_vm0, %v3301_v4 }
 0x285   : > { %2638 = vmatpush3.msra.mxu0 %v1005_v21  ;;  %2616 = vmatprep.mubr.msk.f32.mxu0 %vm1041_vm0, %v3304_v6 }
 0x286   : > { %v1726_v53 = vpop.trf.xlu1 }
 0x288   : > { %2617 = vmatmul.mubr.msk.f32.gmra.mrb[2].mxu0 %vm1041_vm0, %v3307_v8 }
 0x289   : > { %2619 = vmatprep.mubr.msk.f32.mxu0 %vm1041_vm0, %v3310_v10 }
 0x28a   : > { %v1727_v54 = vpop.trf.xlu1 }
 0x28c   : > { %2620 = vmatmul.mubr.msk.f32.gmra.mrb[28].mxu0 %vm1041_vm0, %v3313_v12 }
 0x28d   : > { %2622 = vmatprep.mubr.msk.f32.mxu0 %vm1041_vm0, %v3316_v14 }
 0x28e   : > { %v1728_v55 = vpop.trf.xlu1 }
 0x290   : > { %2623 = vmatmul.mubr.msk.f32.gmra.mrb[30].mxu0 %vm1041_vm0, %v3319_v16 }
 0x291   : > { %2625 = vmatprep.mubr.msk.f32.mxu0 %vm1041_vm0, %v1484_v0 }
 0x292   : > { %v1729_v56 = vpop.trf.xlu1 }
 0x294   : > { %2626 = vmatmul.mubr.msk.f32.gmra.mrb[32].mxu0 %vm1041_vm0, %v1485_v22 }
 0x295   : > { %2628 = vmatprep.mubr.msk.f32.mxu0 %vm1041_vm0, %v1486_v24 }
 0x296   : > { %v1730_v57 = vpop.trf.xlu1 }
 0x298   : > { %2629 = vmatmul.mubr.msk.f32.gmra.mrb[34].mxu0 %vm1041_vm0, %v1487_v26 }
 0x299   : > { %2631 = vmatprep.mubr.msk.f32.mxu0 %vm1041_vm0, %v1488_v29 }
 0x29a   : > { %v1731_v58 = vpop.trf.xlu1 }
 0x29c   : > { %2632 = vmatmul.mubr.msk.f32.gmra.mrb[36].mxu0 %vm1041_vm0, %v1489_v31 }
 0x29d   : > { %2634 = vmatprep.mubr.msk.f32.mxu0 %vm1041_vm0, %v1490_v33 }
 0x29e   : > { %v1732_v59 = vpop.trf.xlu1 }
 0x2a0   : > { %2635 = vmatmul.mubr.msk.f32.gmra.mrb[38].mxu0 %vm1041_vm0, %v1491_v37 }
 0x2a1   : > { %2639 = vmatprep.mubr.msk.f32.mxu0 %vm1041_vm0, %v1717_v35 }
 0x2a4   : > { %2640 = vmatmul.mubr.msk.f32.vlgmr.msra.gmra.mrb[0].mxu0 %vm1041_vm0, %v1718_v41 }
 0x2a5   : > { %2642 = vmatprep.mubr.msk.f32.mxu0 %vm1041_vm0, %v1719_v43 }
 0x2a8   : > { %2643 = vmatmul.mubr.msk.f32.gmra.mrb[2].mxu0 %vm1041_vm0, %v1720_v46 }
 0x2a9   : > { %2645 = vmatprep.mubr.msk.f32.mxu0 %vm1041_vm0, %v1721_v48 }
 0x2ac   : > { %2646 = vmatmul.mubr.msk.f32.gmra.mrb[40].mxu0 %vm1041_vm0, %v1722_v50 }
 0x2ad   : > { %2648 = vmatprep.mubr.msk.f32.mxu0 %vm1041_vm0, %v1723_v51 }
 0x2b0   : > { %2649 = vmatmul.mubr.msk.f32.gmra.mrb[42].mxu0 %vm1041_vm0, %v1724_v52 }
 0x2b1   : > { %2651 = vmatprep.mubr.msk.f32.mxu0 %vm1041_vm0, %v1725_v27 }
 0x2b4   : > { %2652 = vmatmul.mubr.msk.f32.gmra.mrb[44].mxu0 %vm1041_vm0, %v1726_v53 }
 0x2b5   : > { %2654 = vmatprep.mubr.msk.f32.mxu0 %vm1041_vm0, %v1727_v54 }
 0x2b8   : > { %2655 = vmatmul.mubr.msk.f32.gmra.mrb[46].mxu0 %vm1041_vm0, %v1728_v55 }
 0x2b9   : > { %2657 = vmatprep.mubr.msk.f32.mxu0 %vm1041_vm0, %v1729_v56 }
 0x2bc   : > { %2658 = vmatmul.mubr.msk.f32.gmra.mrb[48].mxu0 %vm1041_vm0, %v1730_v57 }
 0x2bd   : > { %2660 = vmatprep.mubr.msk.f32.mxu0 %vm1041_vm0, %v1731_v58 }
 0x2c0   : > { %2661 = vmatmul.mubr.msk.f32.gmra.mrb[50].mxu0 %vm1041_vm0, %v1732_v59 }
 0x2eb   : > { %v2569_v60 = vpop.f32.mrb[4].mxu0 }
 0x2ec   : > { %v1176_v61 = vpop.f32.mrb[5].mxu0 }
 0x2f3   : > { %v2572_v62 = vpop.f32.mrb[6].mxu0 }
 0x2f4   : > { %v1186_v63 = vpop.f32.mrb[7].mxu0 }
 0x2fb   : > { %v2575_v1 = vpop.f32.mrb[8].mxu0 }
 0x2fc   : > { %v1196_v2 = vpop.f32.mrb[9].mxu0 }
 0x303   : > { %v2578_v3 = vpop.f32.mrb[10].mxu0 }
 0x304   : > { %v1206_v4 = vpop.f32.mrb[11].mxu0 }
 0x30b   : > { %v2581_v5 = vpop.f32.mrb[12].mxu0 }
 0x30c   : > { %v1216_v6 = vpop.f32.mrb[13].mxu0 }
 0x313   : > { %v2584_v7 = vpop.f32.mrb[14].mxu0 }
 0x314   : > { %v1226_v8 = vpop.f32.mrb[15].mxu0 }
 0x32b   : > { %v2595_v9 = vpop.f32.mrb[16].mxu0 }
 0x32c   : > { %v1401_v10 = vpop.f32.mrb[17].mxu0 }
 0x333   : > { %v2598_v11 = vpop.f32.mrb[18].mxu0 }
 0x334   : > { %v1411_v12 = vpop.f32.mrb[19].mxu0 }
 0x33b   : > { %v2601_v13 = vpop.f32.mrb[20].mxu0 }
 0x33c   : > { %v1421_v14 = vpop.f32.mrb[21].mxu0 }
 0x343   : > { %v2604_v15 = vpop.f32.mrb[22].mxu0 }
 0x344   : > { %v1431_v16 = vpop.f32.mrb[23].mxu0 }
 0x34b   : > { %v2607_v17 = vpop.f32.mrb[24].mxu0 }
 0x34c   : > { %v1441_v18 = vpop.f32.mrb[25].mxu0 }
 0x353   : > { %v2610_v0 = vpop.f32.mrb[26].mxu0 }
 0x354   : > { %v1451_v20 = vpop.f32.mrb[27].mxu0 }
 0x35f   : > { %v2621_v21 = vpop.f32.mrb[28].mxu0 }
 0x360   : > { %v1626_v22 = vpop.f32.mrb[29].mxu0 }
 0x363   : > { %v2624_v23 = vpop.f32.mrb[30].mxu0 }
 0x364   : > { %v1636_v24 = vpop.f32.mrb[31].mxu0 }
 0x367   : > { %v2627_v25 = vpop.f32.mrb[32].mxu0 }
 0x368   : > { %v1646_v26 = vpop.f32.mrb[33].mxu0 }
 0x36b   : > { %v2630_v28 = vpop.f32.mrb[34].mxu0 }
 0x36c   : > { %v1656_v29 = vpop.f32.mrb[35].mxu0 }
 0x36f   : > { %v2633_v30 = vpop.f32.mrb[36].mxu0 }
 0x370   : > { %v1666_v31 = vpop.f32.mrb[37].mxu0 }
 0x373   : > { %v2636_v32 = vpop.f32.mrb[38].mxu0 }
 0x374   : > { %v1676_v33 = vpop.f32.mrb[39].mxu0 }
 0x377   : > { %v2641_v34 = vpop.f32.mrb[0].mxu0 }
 0x378   : > { %v2010_v37 = vmul.f32 0.03125, %v2641_v34  ;;  %v1847_v38 = vpop.f32.mrb[1].mxu0 }
 0x379   : > { %v2009_v35 = vmul.f32 0.03125, %v1847_v38 }
 0x37a   : > { %v2075_v39 = vmax.f32 %v2010_v37, -1e+30 }
 0x37b   : > { %v2074_v40 = vmax.f32 %v2009_v35, -1e+30  ;;  %v2644_v41 = vpop.f32.mrb[2].mxu0 }
 0x37c   : > { %v2079_v42 = vmax.f32 %v2075_v39, -1e+30  ;;  %v2012_v43 = vmul.f32 0.03125, %v2644_v41  ;;  %v1857_v44 = vpop.f32.mrb[3].mxu0 }
 0x37d   : > { %v2078_v45 = vmax.f32 %v2074_v40, -1e+30  ;;  %v2011_v46 = vmul.f32 0.03125, %v1857_v44 }
 0x37e   : > { %v2083_v47 = vmax.f32 %v2079_v42, -1e+30  ;;  %v2061_v48 = vsel %vm2045_vm1, %v2012_v43, -1e+30 }
 0x37f   : > { %v2082_v49 = vmax.f32 %v2078_v45, -1e+30  ;;  %v2077_v50 = vmax.f32 %v2061_v48, -1e+30  ;;  %v2076_v51 = vmax.f32 %v2011_v46, -1e+30 }
 0x380   : > { %v2647_v52 = vpop.f32.mrb[40].mxu0 }
 0x381   : > { %v2086_v27 = vmax.f32 %v2082_v49, %v2083_v47  ;;  %v2081_v19 = vmax.f32 %v2077_v50, -1e+30  ;;  %v2080_v53 = vmax.f32 %v2076_v51, -1e+30  ;;  %v1867_v54 = vpop.f32.mrb[41].mxu0 }
 0x383   : > { %v2085_v55 = vmax.f32 %v2081_v19, -1e+30  ;;  %v2084_v56 = vmax.f32 %v2080_v53, -1e+30  ;;  %v2650_v57 = vpop.f32.mrb[42].mxu0 }
 0x384   : > { %v1877_v58 = vpop.f32.mrb[43].mxu0 }
 0x385   : > { %v2087_v59 = vmax.f32 %v2084_v56, %v2085_v55 }
 0x387   : > { %v2088_v60 = vmax.f32 %v2086_v27, %v2087_v59  ;;  %v2653_v61 = vpop.f32.mrb[44].mxu0 }
 0x388   : > { %v1887_v62 = vpop.f32.mrb[45].mxu0 }
 0x389   : > { %v2089_v63 = vrot.slane %v2088_v60, 4 }
 0x38b   : > { %v2090_v1 = vmax.f32 %v2088_v60, %v2089_v63  ;;  %v2656_v2 = vpop.f32.mrb[46].mxu0 }
 0x38c   : > { %v1897_v3 = vpop.f32.mrb[47].mxu0 }
 0x38d   : > { %v2091_v4 = vrot.slane %v2090_v1, 2 }
 0x38f   : > { %v2092_v5 = vmax.f32 %v2090_v1, %v2091_v4  ;;  %v2659_v6 = vpop.f32.mrb[48].mxu0 }
 0x390   : > { %v1907_v7 = vpop.f32.mrb[49].mxu0 }
 0x391   : > { %v2093_v8 = vrot.slane %v2092_v5, 1 }
 0x393   : > { %v2094_v9 = vmax.f32 %v2092_v5, %v2093_v8  ;;  %v2662_v10 = vpop.f32.mrb[50].mxu0 }
 0x394   : > { %v1917_v11 = vpop.f32.mrb[51].mxu0 }
 0x395   : > { %v2095_v12 = vsub.f32 %v2009_v35, %v2094_v9  ;;  %v2096_v13 = vsub.f32 %v2010_v37, %v2094_v9  ;;  %v2097_v14 = vsub.f32 %v2011_v46, %v2094_v9  ;;  %v2098_v15 = vsub.f32 %v2061_v48, %v2094_v9 }
 0x396   : > { %v2099_v18 = vsub.f32 -1e+30, %v2094_v9 }
 0x397   : > { %v2111_v16 = vmul.f32 1.442695, %v2095_v12  ;;  %v2113_v17 = vmul.f32 1.442695, %v2096_v13  ;;  %v2115_v0 = vmul.f32 1.442695, %v2097_v14 }
 0x398   : > { %v2117_v20 = vmul.f32 1.442695, %v2098_v15  ;;  %v2119_v21 = vmul.f32 1.442695, %v2099_v18 }
 0x399   : > { %2850 = vpow2.f32 %v2111_v16 }
 0x39a   : > { %2852 = vpow2.f32 %v2113_v17 }
 0x39b   : > { %2854 = vpow2.f32 %v2115_v0 }
 0x39c   : > { %2856 = vpow2.f32 %v2117_v20 }
 0x39d   : > { %2858 = vpow2.f32 %v2119_v21 }
 0x3a3   : > { %v2851_v22 = vpop.eup %2850 }
 0x3a4   : > { %v2853_v23 = vpop.eup %2852 }
 0x3a5   : > { %v2143_v24 = vadd.f32 %v2853_v23, %v2851_v22  ;;  %v2855_v25 = vpop.eup %2854 }
 0x3a6   : > { %v2857_v28 = vpop.eup %2856 }
 0x3a7   : > { %v2144_v26 = vadd.f32 %v2855_v25, %v2143_v24  ;;  %v2859_v30 = vpop.eup %2858 }
 0x3a9   : > { %v2145_v29 = vadd.f32 %v2857_v28, %v2144_v26 }
 0x3ab   : > { %v2146_v31 = vadd.f32 %v2859_v30, %v2145_v29 }
 0x3ad   : > { %v2147_v32 = vadd.f32 %v2859_v30, %v2146_v31 }
 0x3af   : > { %v2148_v33 = vadd.f32 %v2859_v30, %v2147_v32 }
 0x3b1   : > { %v2149_v34 = vadd.f32 %v2859_v30, %v2148_v33 }
 0x3b3   : > { %v2150_v36 = vadd.f32 %v2859_v30, %v2149_v34 }
 0x3b5   : > { %v2151_v37 = vadd.f32 %v2859_v30, %v2150_v36 }
 0x3b7   : > { %v2152_v38 = vadd.f32 %v2859_v30, %v2151_v37 }
 0x3b9   : > { %v2153_v35 = vadd.f32 %v2859_v30, %v2152_v38 }
 0x3bb   : > { %v2154_v39 = vadd.f32 %v2859_v30, %v2153_v35 }
 0x3bd   : > { %v2155_v40 = vadd.f32 %v2859_v30, %v2154_v39 }
 0x3bf   : > { %v2156_v41 = vadd.f32 %v2859_v30, %v2155_v40 }
 0x3c1   : > { %v2157_v42 = vadd.f32 %v2859_v30, %v2156_v41 }
 0x3c3   : > { %v2158_v43 = vrot.slane %v2157_v42, 4 }
 0x3c5   : > { %v2159_v44 = vadd.f32 %v2158_v43, %v2157_v42 }
 0x3c7   : > { %v2160_v45 = vrot.slane %v2159_v44, 2 }
 0x3c9   : > { %v2161_v46 = vadd.f32 %v2160_v45, %v2159_v44 }
 0x3cb   : > { %v2162_v47 = vrot.slane %v2161_v46, 1 }
 0x3cd   : > { %v2163_v48 = vadd.f32 %v2162_v47, %v2161_v46 }
 0x3cf   : > { %2860 = vrcp.f32 %v2163_v48 }
 0x3d9   : > { %v2861_v49 = vpop.eup %2860 }
 0x3da   : > { %v2165_v50 = vmul.f32 %v2861_v49, %v2851_v22  ;;  %v2166_v51 = vmul.f32 %v2861_v49, %v2853_v23  ;;  %v2167_v52 = vmul.f32 %v2861_v49, %v2855_v25  ;;  %v2168_v27 = vmul.f32 %v2861_v49, %v2857_v28 }
 0x3db   : > { %v2169_v19 = vmul.f32 %v2861_v49, %v2859_v30 }
 0x3dc   : > { %2181 = vst [vmem:[%s371_s21] sm:$0xff] %v2165_v50  ;;  %2182 = vst [vmem:[%s371_s21 + $0x8] sm:$0xff] %v2166_v51 }
 0x3dd   : > { %2183 = vst [vmem:[%s371_s21 + $0x10] sm:$0xff] %v2167_v52  ;;  %2184 = vst [vmem:[%s371_s21 + $0x18] sm:$0xff] %v2168_v27 }
 0x3de   : > { %2185 = vst [vmem:[%s371_s21 + $0x20] sm:$0xff] %v2169_v19  ;;  %2186 = vst [vmem:[%s371_s21 + $0x28] sm:$0xff] %v2169_v19 }
 0x3df   : > { %2187 = vst [vmem:[%s371_s21 + $0x30] sm:$0xff] %v2169_v19  ;;  %2188 = vst [vmem:[%s371_s21 + $0x38] sm:$0xff] %v2169_v19 }
 0x3e0   : > { %2189 = vst [vmem:[%s371_s21 + $0x40] sm:$0xff] %v2169_v19  ;;  %2190 = vst [vmem:[%s371_s21 + $0x48] sm:$0xff] %v2169_v19 }
 0x3e1   : > { %2191 = vst [vmem:[%s371_s21 + $0x50] sm:$0xff] %v2169_v19  ;;  %2192 = vst [vmem:[%s371_s21 + $0x58] sm:$0xff] %v2169_v19 }
 0x3e2   : > { %2193 = vst [vmem:[%s371_s21 + $0x60] sm:$0xff] %v2169_v19  ;;  %2194 = vst [vmem:[%s371_s21 + $0x68] sm:$0xff] %v2169_v19 }
 0x3e3   : > { %2195 = vst [vmem:[%s371_s21 + $0x70] sm:$0xff] %v2169_v19  ;;  %2196 = vst [vmem:[%s371_s21 + $0x78] sm:$0xff] %v2169_v19 }
 0x3e4 PF: > { %s21_s26 = sadd.s32 1, %s3036_s26   ;;  %s3410_s24 = smov %s3032_s25 }
 0x3e5   : > { %p18_p7 = scmp.ge.s32.totalorder %s21_s26, 4   ;;  %s3411_s25 = smov %s3413_s12 }
 0x3e7   :  { %20 = sbr.rel (!%p18_p7) target bundleno = 4 (0x4), region = 115 }
 0x3ee   :  { %2233 = vsyncpa [#allocation5], 1 }
 0x3ef   :  { %2235 = vsyncpa [#allocation5 + $0x1], 1 }
 0x3f0   :  { %2236 = vsyncpa [#allocation7], 1 }
 0x3f1   :  { %2237 = vsyncpa [#allocation10], 1 }

// kernel: unit_gcn_forward.3
= control target key start
LH: loop header
LB: loop body
LE: loop exit
PB: predicated region body
PF: predicated region fallthrough
CT: control target
= control target key end

     0   :  { %s2753_s18 = smov 0   ;;  %s2755_s19 = smov 0   ;;  %s3297_s0 = inlined_call_operand.vmem [shape: bf16[2,8,128], index: 0, kind: input, shape index: {}]   ;;  %s3298_s1 = inlined_call_operand.vmem [shape: bf16[4,128,512], index: 1, kind: input, shape index: {}]   ;;  %s3299_s2 = inlined_call_operand.vmem [shape: bf16[2,128,512], index: 2, kind: input, shape index: {}]   ;;  %s3300_s3 = inlined_call_operand.vmem [shape: f32[2,4,512], index: 3, kind: input, shape index: {}]   ;;  %s3301_s4 = inlined_call_operand.vmem [shape: f32[2,1,512], index: 4, kind: input, shape index: {}]   ;;  %s3302_s5 = inlined_call_operand.vmem [shape: f32[2,8,512], index: 5, kind: output, shape index: {}]  }
   0x1   :  { %s2757_s20 = smov 0  }
   0x2 LB: > { %s34_s21 = sadd.s32 1, %s2716_s19  ;;  %p2163_p0 = scmp.ge.s32.totalorder %s2720_s20, 1  ;;  %s2720_s20 = sphi %s2757_s20, %s15_s20   ;;  %s2716_s19 = sphi %s2755_s19, %s3304_s19   ;;  %s2712_s18 = sphi %s2753_s18, %s3303_s18  }
   0x3   : > { %p36_p1 = scmp.ge.s32.totalorder %s34_s21, 2  ;;  %p275_p2 = scmp.lt.s32.totalorder %s2720_s20, 3 }
   0x5   : > { %s3306_s21 = smov (%p36_p1, %s34_s21), 0  ;;  %p276_p3 = pnand %p2163_p0, %p275_p2 }
   0x6   : > { %v2458_v0 = vld [vmem:[%s3298_s1 + $0x4] ss:$16 sps:$4 sm:$0xff] (!%p276_p3)   ;;  %v2460_v1 = vld [vmem:[%s3298_s1 + $0xc] ss:$16 sps:$4 sm:$0xff] (!%p276_p3)   ;;  %v2722_v2 = vmov (!%p276_p3), 0   ;;  %p344_p4 = scmp.lt.s32.totalorder (!%p276_p3), %s2712_s18, 1 }
   0x7   : > { %279 = sbr.rel (%p276_p3) target bundleno = 386 (0x182), region = 40  ;;  %629 = vmatprep.mubr.bf16.mxu0 (!%p276_p3), %v2722_v2  ;;  %670 = vmatprep.mubr.bf16.mxu1 (!%p276_p3), %v2722_v2  ;;  %v2462_v3 = vld [vmem:[%s3298_s1] ss:$16 sps:$4 sm:$0xff] (!%p276_p3)   ;;  %v2463_v4 = vld [vmem:[%s3298_s1 + $0x8] ss:$16 sps:$4 sm:$0xff] (!%p276_p3)  }
   0x8   : > { %597 = vmatprep.subr.bf16.mxu0 (!%p276_p3), %v2458_v0  ;;  %638 = vmatprep.subr.bf16.mxu1 (!%p276_p3), %v2460_v1  ;;  %v2464_v5 = vld [vmem:[%s3298_s1 + $0x24] ss:$16 sps:$4 sm:$0xff] (!%p276_p3)   ;;  %v2466_v6 = vld [vmem:[%s3298_s1 + $0x2c] ss:$16 sps:$4 sm:$0xff] (!%p276_p3)   ;;  %v2468_v7 = vld [vmem:[%s3298_s1 + $0x20] ss:$16 sps:$4 sm:$0xff] (!%p276_p3)  }
   0x9   : > { %598 = vmatpush1.bf16.msra.mxu0 (!%p276_p3), %v2462_v3  ;;  %639 = vmatpush1.bf16.msra.mxu1 (!%p276_p3), %v2463_v4  ;;  %v2469_v8 = vld [vmem:[%s3298_s1 + $0x28] ss:$16 sps:$4 sm:$0xff] (!%p276_p3)   ;;  %v2470_v9 = vld [vmem:[%s3298_s1 + $0x44] ss:$16 sps:$4 sm:$0xff] (!%p276_p3)   ;;  %v2472_v10 = vld [vmem:[%s3298_s1 + $0x4c] ss:$16 sps:$4 sm:$0xff] (!%p276_p3)  }
   0xa   : > { %599 = vmatprep.subr.bf16.mxu0 (!%p276_p3), %v2464_v5  ;;  %640 = vmatprep.subr.bf16.mxu1 (!%p276_p3), %v2466_v6  ;;  %v2474_v11 = vld [vmem:[%s3298_s1 + $0x40] ss:$16 sps:$4 sm:$0xff] (!%p276_p3)   ;;  %v2475_v12 = vld [vmem:[%s3298_s1 + $0x48] ss:$16 sps:$4 sm:$0xff] (!%p276_p3)   ;;  %v2476_v13 = vld [vmem:[%s3298_s1 + $0x64] ss:$16 sps:$4 sm:$0xff] (!%p276_p3)  }
   0xb   : > { %v2478_v14 = vld [vmem:[%s3298_s1 + $0x6c] ss:$16 sps:$4 sm:$0xff] (!%p276_p3)   ;;  %v2480_v15 = vld [vmem:[%s3298_s1 + $0x60] ss:$16 sps:$4 sm:$0xff] (!%p276_p3)   ;;  %v2481_v16 = vld [vmem:[%s3298_s1 + $0x68] ss:$16 sps:$4 sm:$0xff] (!%p276_p3)  }
   0xc   : > { %v2482_v17 = vld [vmem:[%s3298_s1 + $0x84] ss:$16 sps:$4 sm:$0xff] (!%p276_p3)   ;;  %v2484_v18 = vld [vmem:[%s3298_s1 + $0x8c] ss:$16 sps:$4 sm:$0xff] (!%p276_p3)   ;;  %v2486_v19 = vld [vmem:[%s3298_s1 + $0x80] ss:$16 sps:$4 sm:$0xff] (!%p276_p3)  }
   0xd   : > { %600 = vmatpush1.bf16.msra.mxu0 (!%p276_p3), %v2468_v7  ;;  %641 = vmatpush1.bf16.msra.mxu1 (!%p276_p3), %v2469_v8  ;;  %v2487_v20 = vld [vmem:[%s3298_s1 + $0x88] ss:$16 sps:$4 sm:$0xff] (!%p276_p3)   ;;  %v2488_v21 = vld [vmem:[%s3298_s1 + $0xa4] ss:$16 sps:$4 sm:$0xff] (!%p276_p3)   ;;  %v2490_v22 = vld [vmem:[%s3298_s1 + $0xac] ss:$16 sps:$4 sm:$0xff] (!%p276_p3)  }
   0xe   : > { %601 = vmatprep.subr.bf16.mxu0 %v2470_v9  ;;  %642 = vmatprep.subr.bf16.mxu1 %v2472_v10  ;;  %v2492_v23 = vld [vmem:[%s3298_s1 + $0xa0] ss:$16 sps:$4 sm:$0xff]   ;;  %v2493_v24 = vld [vmem:[%s3298_s1 + $0xa8] ss:$16 sps:$4 sm:$0xff]   ;;  %s3308_s18 = smov (!%p344_p4, %s2712_s18), 1 }
   0xf   : > { %v2494_v25 = vld [vmem:[%s3298_s1 + $0xc4] ss:$16 sps:$4 sm:$0xff]   ;;  %v2496_v26 = vld [vmem:[%s3298_s1 + $0xcc] ss:$16 sps:$4 sm:$0xff]   ;;  %v2498_v27 = vld [vmem:[%s3298_s1 + $0xc0] ss:$16 sps:$4 sm:$0xff]  }
  0x10   : > { %v2499_v28 = vld [vmem:[%s3298_s1 + $0xc8] ss:$16 sps:$4 sm:$0xff]   ;;  %s2164_s11 = sshll.u32 %s3308_s18, 2  ;;  %v2500_v29 = vld [vmem:[%s3298_s1 + $0xe4] ss:$16 sps:$4 sm:$0xff]   ;;  %s2430_s29 = sshll.u32 %s3308_s18, 8 }
  0x11   : > { %602 = vmatpush1.bf16.msra.mxu0 %v2474_v11  ;;  %643 = vmatpush1.bf16.msra.mxu1 %v2475_v12  ;;  %v2502_v30 = vld [vmem:[%s3298_s1 + $0xec] ss:$16 sps:$4 sm:$0xff]   ;;  %v2504_v31 = vld [vmem:[%s3298_s1 + $0xe0] ss:$16 sps:$4 sm:$0xff]   ;;  %s350_s24 = scalar_lea.vmem %s3297_s0, %s2164_s11  ;;  %v2505_v32 = vld [vmem:[%s3298_s1 + $0xe8] ss:$16 sps:$4 sm:$0xff]   ;;  %s2993_s14 = scalar_lea.vmem %s3299_s2, %s2430_s29 }
  0x12   : > { %603 = vmatprep.subr.bf16.mxu0 %v2476_v13  ;;  %644 = vmatprep.subr.bf16.mxu1 %v2478_v14  ;;  %v2508_v33 = vld [vmem:[%s3298_s1 + $0x104] ss:$16 sps:$4 sm:$0xff]   ;;  %v2511_v34 = vld [vmem:[%s3298_s1 + $0x10c] ss:$16 sps:$4 sm:$0xff]   ;;  %v2887_v35 = vld [vmem:[%s350_s24] sm:$0xf]  ;;  %s384_s6 = scalar_lea.vmem %s3301_s4, %s2164_s11 }
  0x13   : > { %v2506_v36 = vld [vmem:[%s3298_s1 + $0x100] ss:$16 sps:$4 sm:$0xff]   ;;  %v2509_v37 = vld [vmem:[%s3298_s1 + $0x108] ss:$16 sps:$4 sm:$0xff]   ;;  %v2514_v38 = vld [vmem:[%s3298_s1 + $0x124] ss:$16 sps:$4 sm:$0xff]  }
  0x14   : > { %v2517_v39 = vld [vmem:[%s3298_s1 + $0x12c] ss:$16 sps:$4 sm:$0xff]   ;;  %v2512_v40 = vld [vmem:[%s3298_s1 + $0x120] ss:$16 sps:$4 sm:$0xff]   ;;  %v2515_v41 = vld [vmem:[%s3298_s1 + $0x128] ss:$16 sps:$4 sm:$0xff]  }
  0x15   : > { %604 = vmatpush1.bf16.msra.mxu0 %v2480_v15  ;;  %645 = vmatpush1.bf16.msra.mxu1 %v2481_v16  ;;  %v2520_v42 = vld [vmem:[%s3298_s1 + $0x144] ss:$16 sps:$4 sm:$0xff]   ;;  %v2523_v43 = vld [vmem:[%s3298_s1 + $0x14c] ss:$16 sps:$4 sm:$0xff]   ;;  %v2518_v44 = vld [vmem:[%s3298_s1 + $0x140] ss:$16 sps:$4 sm:$0xff]  }
  0x16   : > { %605 = vmatprep.subr.bf16.mxu0 %v2482_v17  ;;  %646 = vmatprep.subr.bf16.mxu1 %v2484_v18  ;;  %v2521_v45 = vld [vmem:[%s3298_s1 + $0x148] ss:$16 sps:$4 sm:$0xff]   ;;  %v2526_v46 = vld [vmem:[%s3298_s1 + $0x164] ss:$16 sps:$4 sm:$0xff]   ;;  %v2529_v47 = vld [vmem:[%s3298_s1 + $0x16c] ss:$16 sps:$4 sm:$0xff]  }
  0x17   : > { %v2524_v48 = vld [vmem:[%s3298_s1 + $0x160] ss:$16 sps:$4 sm:$0xff]   ;;  %v2527_v49 = vld [vmem:[%s3298_s1 + $0x168] ss:$16 sps:$4 sm:$0xff]   ;;  %v2532_v50 = vld [vmem:[%s3298_s1 + $0x184] ss:$16 sps:$4 sm:$0xff]  }
  0x18   : > { %v2535_v51 = vld [vmem:[%s3298_s1 + $0x18c] ss:$16 sps:$4 sm:$0xff]   ;;  %v2530_v52 = vld [vmem:[%s3298_s1 + $0x180] ss:$16 sps:$4 sm:$0xff]   ;;  %v2533_v53 = vld [vmem:[%s3298_s1 + $0x188] ss:$16 sps:$4 sm:$0xff]  }
  0x19   : > { %606 = vmatpush1.bf16.msra.mxu0 %v2486_v19  ;;  %647 = vmatpush1.bf16.msra.mxu1 %v2487_v20  ;;  %v2538_v54 = vld [vmem:[%s3298_s1 + $0x1a4] ss:$16 sps:$4 sm:$0xff]   ;;  %v2541_v55 = vld [vmem:[%s3298_s1 + $0x1ac] ss:$16 sps:$4 sm:$0xff]   ;;  %v2536_v56 = vld [vmem:[%s3298_s1 + $0x1a0] ss:$16 sps:$4 sm:$0xff]  }
  0x1a   : > { %607 = vmatprep.subr.bf16.mxu0 %v2488_v21  ;;  %648 = vmatprep.subr.bf16.mxu1 %v2490_v22  ;;  %v2539_v57 = vld [vmem:[%s3298_s1 + $0x1a8] ss:$16 sps:$4 sm:$0xff]   ;;  %v2544_v58 = vld [vmem:[%s3298_s1 + $0x1c4] ss:$16 sps:$4 sm:$0xff]   ;;  %v2547_v59 = vld [vmem:[%s3298_s1 + $0x1cc] ss:$16 sps:$4 sm:$0xff]  }
  0x1b   : > { %v2542_v60 = vld [vmem:[%s3298_s1 + $0x1c0] ss:$16 sps:$4 sm:$0xff]   ;;  %v2545_v61 = vld [vmem:[%s3298_s1 + $0x1c8] ss:$16 sps:$4 sm:$0xff]   ;;  %v2550_v62 = vld [vmem:[%s3298_s1 + $0x1e4] ss:$16 sps:$4 sm:$0xff]  }
  0x1c   : > { %v2553_v63 = vld [vmem:[%s3298_s1 + $0x1ec] ss:$16 sps:$4 sm:$0xff]   ;;  %v2548_v0 = vld [vmem:[%s3298_s1 + $0x1e0] ss:$16 sps:$4 sm:$0xff]   ;;  %v2551_v1 = vld [vmem:[%s3298_s1 + $0x1e8] ss:$16 sps:$4 sm:$0xff]  }
  0x1d   : > { %608 = vmatpush1.bf16.msra.mxu0 %v2492_v23  ;;  %649 = vmatpush1.bf16.msra.mxu1 %v2493_v24  ;;  %v2556_v3 = vld [vmem:[%s3298_s1 + $0x204] ss:$16 sps:$4 sm:$0xff]   ;;  %v2559_v4 = vld [vmem:[%s3298_s1 + $0x20c] ss:$16 sps:$4 sm:$0xff]   ;;  %v2554_v5 = vld [vmem:[%s3298_s1 + $0x200] ss:$16 sps:$4 sm:$0xff]  }
  0x1e   : > { %609 = vmatprep.subr.bf16.mxu0 %v2494_v25  ;;  %650 = vmatprep.subr.bf16.mxu1 %v2496_v26  ;;  %v2557_v6 = vld [vmem:[%s3298_s1 + $0x208] ss:$16 sps:$4 sm:$0xff]   ;;  %v2562_v7 = vld [vmem:[%s3298_s1 + $0x224] ss:$16 sps:$4 sm:$0xff]   ;;  %v2565_v8 = vld [vmem:[%s3298_s1 + $0x22c] ss:$16 sps:$4 sm:$0xff]  }
  0x1f   : > { %v2560_v9 = vld [vmem:[%s3298_s1 + $0x220] ss:$16 sps:$4 sm:$0xff]   ;;  %v2563_v10 = vld [vmem:[%s3298_s1 + $0x228] ss:$16 sps:$4 sm:$0xff]   ;;  %v2568_v11 = vld [vmem:[%s3298_s1 + $0x244] ss:$16 sps:$4 sm:$0xff]  }
  0x20   : > { %v2571_v12 = vld [vmem:[%s3298_s1 + $0x24c] ss:$16 sps:$4 sm:$0xff]   ;;  %v2566_v13 = vld [vmem:[%s3298_s1 + $0x240] ss:$16 sps:$4 sm:$0xff]   ;;  %v2569_v14 = vld [vmem:[%s3298_s1 + $0x248] ss:$16 sps:$4 sm:$0xff]  }
  0x21   : > { %610 = vmatpush1.bf16.msra.mxu0 %v2498_v27  ;;  %651 = vmatpush1.bf16.msra.mxu1 %v2499_v28  ;;  %v2574_v15 = vld [vmem:[%s3298_s1 + $0x264] ss:$16 sps:$4 sm:$0xff]   ;;  %v2577_v16 = vld [vmem:[%s3298_s1 + $0x26c] ss:$16 sps:$4 sm:$0xff]   ;;  %v2572_v17 = vld [vmem:[%s3298_s1 + $0x260] ss:$16 sps:$4 sm:$0xff]  }
  0x22   : > { %611 = vmatprep.subr.bf16.mxu0 %v2500_v29  ;;  %652 = vmatprep.subr.bf16.mxu1 %v2502_v30  ;;  %v2575_v18 = vld [vmem:[%s3298_s1 + $0x268] ss:$16 sps:$4 sm:$0xff]   ;;  %v2580_v19 = vld [vmem:[%s3298_s1 + $0x284] ss:$16 sps:$4 sm:$0xff]   ;;  %v2583_v20 = vld [vmem:[%s3298_s1 + $0x28c] ss:$16 sps:$4 sm:$0xff]  }
  0x23   : > { %v2578_v21 = vld [vmem:[%s3298_s1 + $0x280] ss:$16 sps:$4 sm:$0xff]   ;;  %v2581_v22 = vld [vmem:[%s3298_s1 + $0x288] ss:$16 sps:$4 sm:$0xff]   ;;  %v2586_v23 = vld [vmem:[%s3298_s1 + $0x2a4] ss:$16 sps:$4 sm:$0xff]  }
  0x24   : > { %v2589_v24 = vld [vmem:[%s3298_s1 + $0x2ac] ss:$16 sps:$4 sm:$0xff]   ;;  %v2584_v25 = vld [vmem:[%s3298_s1 + $0x2a0] ss:$16 sps:$4 sm:$0xff]   ;;  %v2587_v26 = vld [vmem:[%s3298_s1 + $0x2a8] ss:$16 sps:$4 sm:$0xff]  }
  0x25   : > { %612 = vmatpush1.bf16.msra.mxu0 %v2504_v31  ;;  %653 = vmatpush1.bf16.msra.mxu1 %v2505_v32  ;;  %v2592_v27 = vld [vmem:[%s3298_s1 + $0x2c4] ss:$16 sps:$4 sm:$0xff]   ;;  %v2595_v28 = vld [vmem:[%s3298_s1 + $0x2cc] ss:$16 sps:$4 sm:$0xff]   ;;  %v2590_v29 = vld [vmem:[%s3298_s1 + $0x2c0] ss:$16 sps:$4 sm:$0xff]  }
  0x26   : > { %939 = vmatprep.subr.bf16.mxu0 %v2508_v33  ;;  %980 = vmatprep.subr.bf16.mxu1 %v2511_v34  ;;  %v2593_v30 = vld [vmem:[%s3298_s1 + $0x2c8] ss:$16 sps:$4 sm:$0xff]   ;;  %v2598_v31 = vld [vmem:[%s3298_s1 + $0x2e4] ss:$16 sps:$4 sm:$0xff]   ;;  %v2601_v32 = vld [vmem:[%s3298_s1 + $0x2ec] ss:$16 sps:$4 sm:$0xff]  }
  0x27   : > { %v2596_v33 = vld [vmem:[%s3298_s1 + $0x2e0] ss:$16 sps:$4 sm:$0xff]   ;;  %v2599_v34 = vld [vmem:[%s3298_s1 + $0x2e8] ss:$16 sps:$4 sm:$0xff]   ;;  %s2431_s26 = sshll.u32 %s3308_s18, 4  ;;  %s2432_s11 = sshll.u32 %s3308_s18, 5 }
  0x28   : > { %630 = vmatmul.mubr.bf16.vlgmr.msra.gmra.mrb[0].mxu0 %v2887_v35  ;;  %671 = vmatmul.mubr.bf16.vlgmr.msra.gmra.mrb[0].mxu1 %v2887_v35  ;;  %s375_s29 = scalar_lea.vmem %s3300_s3, %s2431_s26  ;;  %s398_s9 = scalar_lea.vmem %s3302_s5, %s2432_s11 }
  0x29   : > { %940 = vmatpush1.bf16.msra.mxu0 %v2506_v36  ;;  %981 = vmatpush1.bf16.msra.mxu1 %v2509_v37  ;;  %v2604_v36 = vld [vmem:[%s2993_s14 + $0x4] ss:$16 sps:$4 sm:$0xff]   ;;  %v2607_v37 = vld [vmem:[%s2993_s14 + $0xc] ss:$16 sps:$4 sm:$0xff]  }
  0x2a   : > { %941 = vmatprep.subr.bf16.mxu0 %v2514_v38  ;;  %982 = vmatprep.subr.bf16.mxu1 %v2517_v39  ;;  %v2602_v38 = vld [vmem:[%s2993_s14] ss:$16 sps:$4 sm:$0xff]   ;;  %v2605_v39 = vld [vmem:[%s2993_s14 + $0x8] ss:$16 sps:$4 sm:$0xff]  }
  0x2b   : > { %971 = vmatprep.mubr.bf16.mxu0 %v2722_v2  ;;  %1012 = vmatprep.mubr.bf16.mxu1 %v2722_v2 }
  0x2d   : > { %942 = vmatpush1.bf16.msra.mxu0 %v2512_v40  ;;  %983 = vmatpush1.bf16.msra.mxu1 %v2515_v41  ;;  %v2610_v40 = vld [vmem:[%s2993_s14 + $0x24] ss:$16 sps:$4 sm:$0xff]   ;;  %v2613_v41 = vld [vmem:[%s2993_s14 + $0x2c] ss:$16 sps:$4 sm:$0xff]  }
  0x2e   : > { %943 = vmatprep.subr.bf16.mxu0 %v2520_v42  ;;  %984 = vmatprep.subr.bf16.mxu1 %v2523_v43  ;;  %v2608_v42 = vld [vmem:[%s2993_s14 + $0x20] ss:$16 sps:$4 sm:$0xff]   ;;  %v2611_v43 = vld [vmem:[%s2993_s14 + $0x28] ss:$16 sps:$4 sm:$0xff]  }
  0x31   : > { %944 = vmatpush1.bf16.msra.mxu0 %v2518_v44  ;;  %985 = vmatpush1.bf16.msra.mxu1 %v2521_v45  ;;  %v2616_v44 = vld [vmem:[%s2993_s14 + $0x44] ss:$16 sps:$4 sm:$0xff]   ;;  %v2619_v45 = vld [vmem:[%s2993_s14 + $0x4c] ss:$16 sps:$4 sm:$0xff]  }
  0x32   : > { %945 = vmatprep.subr.bf16.mxu0 %v2526_v46  ;;  %986 = vmatprep.subr.bf16.mxu1 %v2529_v47  ;;  %v2614_v46 = vld [vmem:[%s2993_s14 + $0x40] ss:$16 sps:$4 sm:$0xff]   ;;  %v2617_v47 = vld [vmem:[%s2993_s14 + $0x48] ss:$16 sps:$4 sm:$0xff]  }
  0x35   : > { %946 = vmatpush1.bf16.msra.mxu0 %v2524_v48  ;;  %987 = vmatpush1.bf16.msra.mxu1 %v2527_v49  ;;  %v2622_v48 = vld [vmem:[%s2993_s14 + $0x64] ss:$16 sps:$4 sm:$0xff]   ;;  %v2625_v49 = vld [vmem:[%s2993_s14 + $0x6c] ss:$16 sps:$4 sm:$0xff]  }
  0x36   : > { %947 = vmatprep.subr.bf16.mxu0 %v2532_v50  ;;  %988 = vmatprep.subr.bf16.mxu1 %v2535_v51  ;;  %v2620_v50 = vld [vmem:[%s2993_s14 + $0x60] ss:$16 sps:$4 sm:$0xff]   ;;  %v2623_v51 = vld [vmem:[%s2993_s14 + $0x68] ss:$16 sps:$4 sm:$0xff]  }
  0x39   : > { %948 = vmatpush1.bf16.msra.mxu0 %v2530_v52  ;;  %989 = vmatpush1.bf16.msra.mxu1 %v2533_v53  ;;  %v2628_v52 = vld [vmem:[%s2993_s14 + $0x84] ss:$16 sps:$4 sm:$0xff]   ;;  %v2631_v53 = vld [vmem:[%s2993_s14 + $0x8c] ss:$16 sps:$4 sm:$0xff]  }
  0x3a   : > { %949 = vmatprep.subr.bf16.mxu0 %v2538_v54  ;;  %990 = vmatprep.subr.bf16.mxu1 %v2541_v55  ;;  %v2626_v54 = vld [vmem:[%s2993_s14 + $0x80] ss:$16 sps:$4 sm:$0xff]   ;;  %v2629_v55 = vld [vmem:[%s2993_s14 + $0x88] ss:$16 sps:$4 sm:$0xff]  }
  0x3d   : > { %950 = vmatpush1.bf16.msra.mxu0 %v2536_v56  ;;  %991 = vmatpush1.bf16.msra.mxu1 %v2539_v57  ;;  %v2634_v56 = vld [vmem:[%s2993_s14 + $0xa4] ss:$16 sps:$4 sm:$0xff]   ;;  %v2637_v57 = vld [vmem:[%s2993_s14 + $0xac] ss:$16 sps:$4 sm:$0xff]  }
  0x3e   : > { %951 = vmatprep.subr.bf16.mxu0 %v2544_v58  ;;  %992 = vmatprep.subr.bf16.mxu1 %v2547_v59  ;;  %v2632_v58 = vld [vmem:[%s2993_s14 + $0xa0] ss:$16 sps:$4 sm:$0xff]   ;;  %v2635_v59 = vld [vmem:[%s2993_s14 + $0xa8] ss:$16 sps:$4 sm:$0xff]  }
  0x41   : > { %952 = vmatpush1.bf16.msra.mxu0 %v2542_v60  ;;  %993 = vmatpush1.bf16.msra.mxu1 %v2545_v61  ;;  %v2640_v60 = vld [vmem:[%s2993_s14 + $0xc4] ss:$16 sps:$4 sm:$0xff]   ;;  %v2643_v61 = vld [vmem:[%s2993_s14 + $0xcc] ss:$16 sps:$4 sm:$0xff]  }
  0x42   : > { %953 = vmatprep.subr.bf16.mxu0 %v2550_v62  ;;  %994 = vmatprep.subr.bf16.mxu1 %v2553_v63  ;;  %v2638_v62 = vld [vmem:[%s2993_s14 + $0xc0] ss:$16 sps:$4 sm:$0xff]   ;;  %v2641_v63 = vld [vmem:[%s2993_s14 + $0xc8] ss:$16 sps:$4 sm:$0xff]  }
  0x45   : > { %954 = vmatpush1.bf16.msra.mxu0 %v2548_v0  ;;  %995 = vmatpush1.bf16.msra.mxu1 %v2551_v1  ;;  %v2646_v0 = vld [vmem:[%s2993_s14 + $0xe4] ss:$16 sps:$4 sm:$0xff]   ;;  %v2649_v1 = vld [vmem:[%s2993_s14 + $0xec] ss:$16 sps:$4 sm:$0xff]  }
  0x46   : > { %1258 = vmatprep.subr.bf16.mxu0 %v2556_v3  ;;  %1299 = vmatprep.subr.bf16.mxu1 %v2559_v4  ;;  %v2644_v3 = vld [vmem:[%s2993_s14 + $0xe0] ss:$16 sps:$4 sm:$0xff]   ;;  %v2647_v4 = vld [vmem:[%s2993_s14 + $0xe8] ss:$16 sps:$4 sm:$0xff]  }
  0x48   : > { %972 = vmatmul.mubr.bf16.vlgmr.msra.gmra.mrb[4].mxu0 %v2887_v35  ;;  %1013 = vmatmul.mubr.bf16.vlgmr.msra.gmra.mrb[4].mxu1 %v2887_v35 }
  0x49   : > { %1259 = vmatpush1.bf16.msra.mxu0 %v2554_v5  ;;  %1300 = vmatpush1.bf16.msra.mxu1 %v2557_v6  ;;  %v2652_v5 = vld [vmem:[%s3298_s1 + $0x304] ss:$16 sps:$4 sm:$0xff]   ;;  %v2655_v6 = vld [vmem:[%s3298_s1 + $0x30c] ss:$16 sps:$4 sm:$0xff]  }
  0x4a   : > { %1260 = vmatprep.subr.bf16.mxu0 %v2562_v7  ;;  %1301 = vmatprep.subr.bf16.mxu1 %v2565_v8  ;;  %v2650_v7 = vld [vmem:[%s3298_s1 + $0x300] ss:$16 sps:$4 sm:$0xff]   ;;  %v2653_v8 = vld [vmem:[%s3298_s1 + $0x308] ss:$16 sps:$4 sm:$0xff]  }
  0x4b   : > { %1290 = vmatprep.mubr.bf16.mxu0 %v2722_v2  ;;  %1331 = vmatprep.mubr.bf16.mxu1 %v2722_v2 }
  0x4d   : > { %1261 = vmatpush1.bf16.msra.mxu0 %v2560_v9  ;;  %1302 = vmatpush1.bf16.msra.mxu1 %v2563_v10  ;;  %v2658_v9 = vld [vmem:[%s3298_s1 + $0x324] ss:$16 sps:$4 sm:$0xff]   ;;  %v2661_v10 = vld [vmem:[%s3298_s1 + $0x32c] ss:$16 sps:$4 sm:$0xff]  }
  0x4e   : > { %1262 = vmatprep.subr.bf16.mxu0 %v2568_v11  ;;  %1303 = vmatprep.subr.bf16.mxu1 %v2571_v12  ;;  %v2656_v11 = vld [vmem:[%s3298_s1 + $0x320] ss:$16 sps:$4 sm:$0xff]   ;;  %v2659_v12 = vld [vmem:[%s3298_s1 + $0x328] ss:$16 sps:$4 sm:$0xff]  }
  0x51   : > { %1263 = vmatpush1.bf16.msra.mxu0 %v2566_v13  ;;  %1304 = vmatpush1.bf16.msra.mxu1 %v2569_v14  ;;  %v2664_v13 = vld [vmem:[%s3298_s1 + $0x344] ss:$16 sps:$4 sm:$0xff]   ;;  %v2667_v14 = vld [vmem:[%s3298_s1 + $0x34c] ss:$16 sps:$4 sm:$0xff]  }
  0x52   : > { %1264 = vmatprep.subr.bf16.mxu0 %v2574_v15  ;;  %1305 = vmatprep.subr.bf16.mxu1 %v2577_v16  ;;  %v2662_v15 = vld [vmem:[%s3298_s1 + $0x340] ss:$16 sps:$4 sm:$0xff]   ;;  %v2665_v16 = vld [vmem:[%s3298_s1 + $0x348] ss:$16 sps:$4 sm:$0xff]  }
  0x55   : > { %1265 = vmatpush1.bf16.msra.mxu0 %v2572_v17  ;;  %1306 = vmatpush1.bf16.msra.mxu1 %v2575_v18  ;;  %v2670_v17 = vld [vmem:[%s3298_s1 + $0x364] ss:$16 sps:$4 sm:$0xff]   ;;  %v2668_v18 = vld [vmem:[%s3298_s1 + $0x360] ss:$16 sps:$4 sm:$0xff]  }
  0x56   : > { %1266 = vmatprep.subr.bf16.mxu0 %v2580_v19  ;;  %1307 = vmatprep.subr.bf16.mxu1 %v2583_v20  ;;  %v2671_v19 = vld [vmem:[%s3298_s1 + $0x368] ss:$16 sps:$4 sm:$0xff]   ;;  %v2676_v20 = vld [vmem:[%s3298_s1 + $0x384] ss:$16 sps:$4 sm:$0xff]  }
  0x59   : > { %1267 = vmatpush1.bf16.msra.mxu0 %v2578_v21  ;;  %1308 = vmatpush1.bf16.msra.mxu1 %v2581_v22  ;;  %v2679_v21 = vld [vmem:[%s3298_s1 + $0x38c] ss:$16 sps:$4 sm:$0xff]   ;;  %v2674_v22 = vld [vmem:[%s3298_s1 + $0x380] ss:$16 sps:$4 sm:$0xff]  }
  0x5a   : > { %1268 = vmatprep.subr.bf16.mxu0 %v2586_v23  ;;  %1309 = vmatprep.subr.bf16.mxu1 %v2589_v24  ;;  %v2677_v23 = vld [vmem:[%s3298_s1 + $0x388] ss:$16 sps:$4 sm:$0xff]   ;;  %v2682_v24 = vld [vmem:[%s3298_s1 + $0x3a4] ss:$16 sps:$4 sm:$0xff]  }
  0x5d   : > { %1269 = vmatpush1.bf16.msra.mxu0 %v2584_v25  ;;  %1310 = vmatpush1.bf16.msra.mxu1 %v2587_v26  ;;  %v2685_v25 = vld [vmem:[%s3298_s1 + $0x3ac] ss:$16 sps:$4 sm:$0xff]   ;;  %v2680_v26 = vld [vmem:[%s3298_s1 + $0x3a0] ss:$16 sps:$4 sm:$0xff]  }
  0x5e   : > { %1270 = vmatprep.subr.bf16.mxu0 %v2592_v27  ;;  %1311 = vmatprep.subr.bf16.mxu1 %v2595_v28  ;;  %v2683_v27 = vld [vmem:[%s3298_s1 + $0x3a8] ss:$16 sps:$4 sm:$0xff]   ;;  %v2688_v28 = vld [vmem:[%s3298_s1 + $0x3c4] ss:$16 sps:$4 sm:$0xff]  }
  0x61   : > { %1271 = vmatpush1.bf16.msra.mxu0 %v2590_v29  ;;  %1312 = vmatpush1.bf16.msra.mxu1 %v2593_v30  ;;  %v2691_v29 = vld [vmem:[%s3298_s1 + $0x3cc] ss:$16 sps:$4 sm:$0xff]   ;;  %v2686_v30 = vld [vmem:[%s3298_s1 + $0x3c0] ss:$16 sps:$4 sm:$0xff]  }
  0x62   : > { %1272 = vmatprep.subr.bf16.mxu0 %v2598_v31  ;;  %1313 = vmatprep.subr.bf16.mxu1 %v2601_v32  ;;  %v2689_v31 = vld [vmem:[%s3298_s1 + $0x3c8] ss:$16 sps:$4 sm:$0xff]   ;;  %v2694_v32 = vld [vmem:[%s3298_s1 + $0x3e4] ss:$16 sps:$4 sm:$0xff]  }
  0x65   : > { %1273 = vmatpush1.bf16.msra.mxu0 %v2596_v33  ;;  %1314 = vmatpush1.bf16.msra.mxu1 %v2599_v34  ;;  %v2697_v33 = vld [vmem:[%s3298_s1 + $0x3ec] ss:$16 sps:$4 sm:$0xff]   ;;  %v2692_v34 = vld [vmem:[%s3298_s1 + $0x3e0] ss:$16 sps:$4 sm:$0xff]  }
  0x66   : > { %1576 = vmatprep.subr.bf16.mxu0 %v2604_v36  ;;  %1617 = vmatprep.subr.bf16.mxu1 %v2607_v37  ;;  %v2695_v36 = vld [vmem:[%s3298_s1 + $0x3e8] ss:$16 sps:$4 sm:$0xff]   ;;  %v681_v37 = vlaneseq }
  0x68   : > { %1291 = vmatmul.mubr.bf16.vlgmr.msra.gmra.mrb[8].mxu0 %v2887_v35  ;;  %1332 = vmatmul.mubr.bf16.vlgmr.msra.gmra.mrb[8].mxu1 %v2887_v35 }
  0x69   : > { %1577 = vmatpush1.bf16.msra.mxu0 %v2602_v38  ;;  %1618 = vmatpush1.bf16.msra.mxu1 %v2605_v39  ;;  %v3228_v38 = vshrl.u32 %v681_v37, 7 }
  0x6a   : > { %1578 = vmatprep.subr.bf16.mxu0 %v2610_v40  ;;  %1619 = vmatprep.subr.bf16.mxu1 %v2613_v41  ;;  %v3234_v40 = vld [vmem:[%s375_s29] sm:$0xff]  ;;  %v3236_v41 = vld [vmem:[%s375_s29 + $0x8] sm:$0xff] }
  0x6b   : > { %1608 = vmatprep.mubr.bf16.mxu0 %v2722_v2  ;;  %1649 = vmatprep.mubr.bf16.mxu1 %v2722_v2  ;;  %v683_v39 = vsub.s32 0, %v3228_v38 }
  0x6d   : > { %1579 = vmatpush1.bf16.msra.mxu0 %v2608_v42  ;;  %1620 = vmatpush1.bf16.msra.mxu1 %v2611_v43  ;;  %v687_v42 = vsub.s32 4, %v3228_v38  ;;  %v692_v43 = vrot.slane %v3236_v41, %v683_v39 }
  0x6e   : > { %1580 = vmatprep.subr.bf16.mxu0 %v2616_v44  ;;  %1621 = vmatprep.subr.bf16.mxu1 %v2619_v45 }
  0x6f   : > { %v688_v44 = vrot.slane %v3234_v40, %v687_v42  ;;  %v696_v45 = vrot.slane %v3236_v41, %v687_v42 }
  0x71   : > { %1581 = vmatpush1.bf16.msra.mxu0 %v2614_v46  ;;  %1622 = vmatpush1.bf16.msra.mxu1 %v2617_v47  ;;  %v3249_v46 = vsub.s32 2, %v3228_v38  ;;  %v404_v47 = vld [vmem:[%s384_s6] sm:$0xf] }
  0x72   : > { %1582 = vmatprep.subr.bf16.mxu0 %v2622_v48  ;;  %1623 = vmatprep.subr.bf16.mxu1 %v2625_v49  ;;  %v728_v48 = vsub.s32 1, %v3228_v38  ;;  %v3253_v49 = vsub.s32 3, %v3228_v38 }
  0x73   : > { %v1343_v37 = vrot.slane %v3234_v40, %v3249_v46 }
  0x75   : > { %1583 = vmatpush1.bf16.msra.mxu0 %v2620_v50  ;;  %1624 = vmatpush1.bf16.msra.mxu1 %v2623_v51  ;;  %v712_v51 = vrot.slane %v692_v43, %v683_v39  ;;  %v1363_v43 = vrot.slane %v1343_v37, %v3249_v46 }
  0x76   : > { %1584 = vmatprep.subr.bf16.mxu0 %v2628_v52  ;;  %1625 = vmatprep.subr.bf16.mxu1 %v2631_v53  ;;  %v708_v52 = vrot.slane %v688_v44, %v683_v39  ;;  %v716_v53 = vrot.slane %v696_v45, %v683_v39 }
  0x79   : > { %1585 = vmatpush1.bf16.msra.mxu0 %v2626_v54  ;;  %1626 = vmatpush1.bf16.msra.mxu1 %v2629_v55  ;;  %v725_v54 = vrot.slane %v404_v47, %v683_v39  ;;  %v733_v55 = vrot.slane %v404_v47, %v3249_v46 }
  0x7a   : > { %1586 = vmatprep.subr.bf16.mxu0 %v2634_v56  ;;  %1627 = vmatprep.subr.bf16.mxu1 %v2637_v57 }
  0x7d   : > { %1587 = vmatpush1.bf16.msra.mxu0 %v2632_v58  ;;  %1628 = vmatpush1.bf16.msra.mxu1 %v2635_v59  ;;  %v729_v58 = vrot.slane %v404_v47, %v728_v48  ;;  %v737_v59 = vrot.slane %v404_v47, %v3253_v49 }
  0x7e   : > { %1588 = vmatprep.subr.bf16.mxu0 %v2640_v60  ;;  %1629 = vmatprep.subr.bf16.mxu1 %v2643_v61 }
  0x81   : > { %1589 = vmatpush1.bf16.msra.mxu0 %v2638_v62  ;;  %1630 = vmatpush1.bf16.msra.mxu1 %v2641_v63 }
  0x82   : > { %1590 = vmatprep.subr.bf16.mxu0 %v2646_v0  ;;  %1631 = vmatprep.subr.bf16.mxu1 %v2649_v1 }
  0x85   : > { %1591 = vmatpush1.bf16.msra.mxu0 %v2644_v3  ;;  %1632 = vmatpush1.bf16.msra.mxu1 %v2647_v4 }
  0x86   : > { %1895 = vmatprep.subr.bf16.mxu0 %v2652_v5  ;;  %1936 = vmatprep.subr.bf16.mxu1 %v2655_v6 }
  0x88   : > { %1609 = vmatmul.mubr.bf16.vlgmr.msra.gmra.mrb[12].mxu0 %v2887_v35  ;;  %1650 = vmatmul.mubr.bf16.vlgmr.msra.gmra.mrb[12].mxu1 %v2887_v35 }
  0x89   : > { %1896 = vmatpush1.bf16.msra.mxu0 %v2650_v7  ;;  %1937 = vmatpush1.bf16.msra.mxu1 %v2653_v8 }
  0x8a   : > { %1897 = vmatprep.subr.bf16.mxu0 %v2658_v9  ;;  %1938 = vmatprep.subr.bf16.mxu1 %v2661_v10 }
  0x8b   : > { %1927 = vmatprep.mubr.bf16.mxu0 %v2722_v2  ;;  %1968 = vmatprep.mubr.bf16.mxu1 %v2722_v2  ;;  %v2673_v2 = vld [vmem:[%s3298_s1 + $0x36c] ss:$16 sps:$4 sm:$0xff]  }
  0x8d   : > { %1898 = vmatpush1.bf16.msra.mxu0 %v2656_v11  ;;  %1939 = vmatpush1.bf16.msra.mxu1 %v2659_v12  ;;  %v1027_v11 = vsub.s32 5, %v3228_v38  ;;  %v1024_v12 = vrot.slane %v3234_v40, %v728_v48 }
  0x8e   : > { %1899 = vmatprep.subr.bf16.mxu0 %v2664_v13  ;;  %1940 = vmatprep.subr.bf16.mxu1 %v2667_v14  ;;  %v1032_v13 = vrot.slane %v3236_v41, %v728_v48 }
  0x8f   : > { %v1028_v14 = vrot.slane %v3234_v40, %v1027_v11 }
  0x91   : > { %1900 = vmatpush1.bf16.msra.mxu0 %v2662_v15  ;;  %1941 = vmatpush1.bf16.msra.mxu1 %v2665_v16  ;;  %v1036_v15 = vrot.slane %v3236_v41, %v1027_v11  ;;  %v1044_v16 = vrot.slane %v1024_v12, %v728_v48 }
  0x92   : > { %1901 = vmatprep.subr.bf16.mxu0 %v2670_v17  ;;  %1942 = vmatprep.subr.bf16.mxu1 %v2673_v2  ;;  %v1052_v17 = vrot.slane %v1032_v13, %v728_v48  ;;  %v1048_v2 = vrot.slane %v1028_v14, %v728_v48 }
  0x95   : > { %1902 = vmatpush1.bf16.msra.mxu0 %v2668_v18  ;;  %1943 = vmatpush1.bf16.msra.mxu1 %v2671_v19  ;;  %v1056_v18 = vrot.slane %v1036_v15, %v728_v48 }
  0x96   : > { %1903 = vmatprep.subr.bf16.mxu0 %v2676_v20  ;;  %1944 = vmatprep.subr.bf16.mxu1 %v2679_v21 }
  0x99   : > { %1904 = vmatpush1.bf16.msra.mxu0 %v2674_v22  ;;  %1945 = vmatpush1.bf16.msra.mxu1 %v2677_v23 }
  0x9a   : > { %1905 = vmatprep.subr.bf16.mxu0 %v2682_v24  ;;  %1946 = vmatprep.subr.bf16.mxu1 %v2685_v25 }
  0x9d   : > { %1906 = vmatpush1.bf16.msra.mxu0 %v2680_v26  ;;  %1947 = vmatpush1.bf16.msra.mxu1 %v2683_v27 }
  0x9e   : > { %1907 = vmatprep.subr.bf16.mxu0 %v2688_v28  ;;  %1948 = vmatprep.subr.bf16.mxu1 %v2691_v29 }
  0xa1   : > { %1908 = vmatpush1.bf16.msra.mxu0 %v2686_v30  ;;  %1949 = vmatpush1.bf16.msra.mxu1 %v2689_v31 }
  0xa2   : > { %1909 = vmatprep.subr.bf16.mxu0 %v2694_v32  ;;  %1950 = vmatprep.subr.bf16.mxu1 %v2697_v33 }
  0xa5   : > { %1910 = vmatpush1.bf16.msra.mxu0 %v2692_v34  ;;  %1951 = vmatpush1.bf16.msra.mxu1 %v2695_v36  ;;  %v1346_v36 = vsub.s32 6, %v3228_v38 }
  0xa7   : > { %v1347_v42 = vrot.slane %v3234_v40, %v1346_v36 }
  0xa8   : > { %1928 = vmatmul.mubr.bf16.vlgmr.msra.gmra.mrb[16].mxu0 %v2887_v35  ;;  %1969 = vmatmul.mubr.bf16.vlgmr.msra.gmra.mrb[16].mxu1 %v2887_v35  ;;  %v684_v35 = vrot.slane %v3234_v40, %v683_v39 }
  0xa9   : > { %v1367_v45 = vrot.slane %v1347_v42, %v3249_v46 }
  0xaa   : > { %v704_v50 = vrot.slane %v684_v35, %v683_v39  ;;  %v1351_v39 = vrot.slane %v3236_v41, %v3249_v46  ;;  %v1355_v35 = vrot.slane %v3236_v41, %v1346_v36 }
  0xac   : > { %v1371_v44 = vrot.slane %v1351_v39, %v3249_v46  ;;  %v1375_v47 = vrot.slane %v1355_v35, %v3249_v46  ;;  %v1661_v46 = vrot.slane %v3234_v40, %v3253_v49 }
  0xfb   : > { %v631_v56 = vpop.f32.mrb[0].mxu0  ;;  %v672_v57 = vpop.f32.mrb[0].mxu1 }
  0xfc   : > { %v717_v60 = vmul.f32 %v704_v50, %v631_v56  ;;  %v719_v61 = vmul.f32 %v712_v51, %v672_v57  ;;  %v633_v62 = vpop.f32.mrb[1].mxu0  ;;  %v674_v63 = vpop.f32.mrb[1].mxu1 }
  0xfd   : > { %v718_v0 = vmul.f32 %v708_v52, %v633_v62  ;;  %v720_v1 = vmul.f32 %v716_v53, %v674_v63  ;;  %v635_v3 = vpop.f32.mrb[2].mxu0  ;;  %v676_v4 = vpop.f32.mrb[2].mxu1 }
  0xfe   : > { %v742_v5 = vadd.f32 %v725_v54, %v717_v60  ;;  %v744_v6 = vadd.f32 %v733_v55, %v719_v61  ;;  %v636_v7 = vpop.f32.mrb[3].mxu0  ;;  %v677_v8 = vpop.f32.mrb[3].mxu1  ;;  %v1669_v3 = vrot.slane %v3236_v41, %v3253_v49 }
  0xff   : > { %v743_v9 = vadd.f32 %v729_v58, %v718_v0  ;;  %v745_v10 = vadd.f32 %v737_v59, %v720_v1  ;;  %v1664_v1 = vsub.s32 7, %v3228_v38 }
 0x100   : > { %v1689_v7 = vrot.slane %v1669_v3, %v3253_v49 }
 0x101   : > { %v1665_v4 = vrot.slane %v3234_v40, %v1664_v1 }
 0x103   : > { %v1685_v8 = vrot.slane %v1665_v4, %v3253_v49 }
 0x11b   : > { %v973_v19 = vpop.f32.mrb[4].mxu0  ;;  %v1014_v20 = vpop.f32.mrb[4].mxu1 }
 0x11c   : > { %v1057_v21 = vmul.f32 %v1044_v16, %v973_v19  ;;  %v1059_v22 = vmul.f32 %v1052_v17, %v1014_v20  ;;  %v975_v23 = vpop.f32.mrb[5].mxu0  ;;  %v1016_v24 = vpop.f32.mrb[5].mxu1 }
 0x11d   : > { %v1058_v25 = vmul.f32 %v1048_v2, %v975_v23  ;;  %v1060_v26 = vmul.f32 %v1056_v18, %v1016_v24  ;;  %v977_v27 = vpop.f32.mrb[6].mxu0  ;;  %v1018_v28 = vpop.f32.mrb[6].mxu1 }
 0x11e   : > { %v1061_v29 = vadd.f32 %v1057_v21, %v742_v5  ;;  %v1063_v30 = vadd.f32 %v1059_v22, %v744_v6  ;;  %v978_v31 = vpop.f32.mrb[7].mxu0  ;;  %v1019_v32 = vpop.f32.mrb[7].mxu1  ;;  %v1673_v5 = vrot.slane %v3236_v41, %v1664_v1  ;;  %v1681_v6 = vrot.slane %v1661_v46, %v3253_v49 }
 0x11f   : > { %v1062_v33 = vadd.f32 %v1058_v25, %v743_v9  ;;  %v1064_v34 = vadd.f32 %v1060_v26, %v745_v10 }
 0x120   : > { %v1693_v9 = vrot.slane %v1673_v5, %v3253_v49 }
 0x13b   : > { %v1292_v48 = vpop.f32.mrb[8].mxu0  ;;  %v1333_v50 = vpop.f32.mrb[8].mxu1 }
 0x13c   : > { %v1376_v51 = vmul.f32 %v1363_v43, %v1292_v48  ;;  %v1378_v52 = vmul.f32 %v1371_v44, %v1333_v50  ;;  %v1294_v53 = vpop.f32.mrb[9].mxu0  ;;  %v1335_v54 = vpop.f32.mrb[9].mxu1 }
 0x13d   : > { %v1377_v55 = vmul.f32 %v1367_v45, %v1294_v53  ;;  %v1379_v56 = vmul.f32 %v1375_v47, %v1335_v54  ;;  %v1296_v57 = vpop.f32.mrb[10].mxu0  ;;  %v1337_v58 = vpop.f32.mrb[10].mxu1 }
 0x13e   : > { %v1380_v59 = vadd.f32 %v1376_v51, %v1061_v29  ;;  %v1382_v60 = vadd.f32 %v1378_v52, %v1063_v30  ;;  %v1297_v61 = vpop.f32.mrb[11].mxu0  ;;  %v1338_v62 = vpop.f32.mrb[11].mxu1 }
 0x13f   : > { %v1381_v63 = vadd.f32 %v1377_v55, %v1062_v33  ;;  %v1383_v0 = vadd.f32 %v1379_v56, %v1064_v34 }
 0x15b   : > { %v1610_v10 = vpop.f32.mrb[12].mxu0  ;;  %v1651_v38 = vpop.f32.mrb[12].mxu1 }
 0x15c   : > { %v1694_v11 = vmul.f32 %v1681_v6, %v1610_v10  ;;  %v1696_v12 = vmul.f32 %v1689_v7, %v1651_v38  ;;  %v1612_v13 = vpop.f32.mrb[13].mxu0  ;;  %v1653_v14 = vpop.f32.mrb[13].mxu1 }
 0x15d   : > { %v1695_v15 = vmul.f32 %v1685_v8, %v1612_v13  ;;  %v1697_v16 = vmul.f32 %v1693_v9, %v1653_v14  ;;  %v1614_v40 = vpop.f32.mrb[14].mxu0  ;;  %v1655_v17 = vpop.f32.mrb[14].mxu1 }
 0x15e   : > { %v1615_v41 = vpop.f32.mrb[15].mxu0  ;;  %v1656_v2 = vpop.f32.mrb[15].mxu1  ;;  %v1698_v18 = vadd.f32 %v1694_v11, %v1380_v59  ;;  %v1700_v19 = vadd.f32 %v1696_v12, %v1382_v60 }
 0x15f   : > { %v1699_v20 = vadd.f32 %v1695_v15, %v1381_v63  ;;  %v1701_v21 = vadd.f32 %v1697_v16, %v1383_v0 }
 0x17b   : > { %v1929_v22 = vpop.f32.mrb[16].mxu0  ;;  %v1970_v49 = vpop.f32.mrb[16].mxu1 }
 0x17c   : > { %v1977_v23 = vadd.f32 %v1929_v22, %v1698_v18  ;;  %v1979_v24 = vadd.f32 %v1970_v49, %v1700_v19  ;;  %v1931_v25 = vpop.f32.mrb[17].mxu0  ;;  %v1972_v26 = vpop.f32.mrb[17].mxu1 }
 0x17d   : > { %v1978_v27 = vadd.f32 %v1931_v25, %v1699_v20  ;;  %v1980_v28 = vadd.f32 %v1972_v26, %v1701_v21  ;;  %v1933_v29 = vpop.f32.mrb[18].mxu0  ;;  %v1974_v30 = vpop.f32.mrb[18].mxu1 }
 0x17e   : > { %v1981_v31 = vmax.f32 %v1977_v23, 0.0  ;;  %v1983_v32 = vmax.f32 %v1979_v24, 0.0  ;;  %v1934_v33 = vpop.f32.mrb[19].mxu0  ;;  %v1975_v34 = vpop.f32.mrb[19].mxu1 }
 0x17f   : > { %v1982_v36 = vmax.f32 %v1978_v27, 0.0  ;;  %v1984_v37 = vmax.f32 %v1980_v28, 0.0 }
 0x180   : > { %1985 = vst [vmem:[%s398_s9] sm:$0xff] %v1981_v31  ;;  %1987 = vst [vmem:[%s398_s9 + $0x10] sm:$0xff] %v1983_v32 }
 0x181   : > { %1986 = vst [vmem:[%s398_s9 + $0x8] sm:$0xff] %v1982_v36  ;;  %1988 = vst [vmem:[%s398_s9 + $0x18] sm:$0xff] %v1984_v37 }
 0x182 PF: > { %s15_s20 = sadd.s32 1, %s2720_s20   ;;  %s3303_s18 = smov %s2716_s19 }
 0x183   : > { %p12_p5 = scmp.ge.s32.totalorder %s15_s20, 4   ;;  %s3304_s19 = smov %s3306_s21 }
 0x185   :  { %14 = sbr.rel (!%p12_p5) target bundleno = 2 (0x2), region = 85 }

</bundles_post_ra>
